<compile_context>
chip_gen: v6e
topology: v6e:2x2x1
jax: 0.10.0
libtpu: 0.0.40
codegen_flags: <defaults>
</compile_context>

<pallas_src>
import functools

import jax
import jax.numpy as jnp
from jax.experimental import pallas as pl
from jax.experimental.pallas import tpu as pltpu

LATENT_DIM = 256
HID = LATENT_DIM * 2       # 512
LANE = 128                 # lane-dense width for the 1-wide second Linear
NEG_SLOPE = 0.01           # PyTorch LeakyReLU default negative_slope


def _cdiv(a, b):
    return -(-a // b)


def _round_up(x, m):
    return _cdiv(x, m) * m


def _vjoint_kernel(x_ref, w1_ref, b1_ref, w2_ref, b2_ref, out_ref, acc_ref,
                   *, p_total, tp):
    # x_ref  : (TN, TP, H)  f32/bf16  current tile of pair encodings
    # w1_ref : (H, H)       bf16      first Linear weight, stored (in, out)
    # b1_ref : (1, H)       f32
    # w2_ref : (H, LANE)    bf16      second Linear weight, real column at lane 0
    # b2_ref : (1, LANE)    f32
    # out_ref: (TN, LANE)   f32       lane-dense output block (column 0 = value)
    # acc_ref: (TN, H)      f32       running pair-sum accumulator
    k = pl.program_id(1)

    @pl.when(k == 0)
    def _():
        acc_ref[...] = jnp.zeros_like(acc_ref)

    x = x_ref[...]                                            # (TN, TP, H)
    if p_total % tp != 0:
        # x is NOT padded in HBM: the last P tile overhangs the array and its
        # out-of-bounds rows hold unspecified data.  Zero them before reducing
        # (cheap VPU work, hidden under the streaming DMA).
        rem = p_total - k * tp
        pair_idx = jax.lax.broadcasted_iota(jnp.int32, x.shape, dimension=1)
        x = jnp.where(pair_idx < rem, x, 0)

    # pair_enc.sum(dim=0) for TN encodings at once, accumulated in f32.
    acc_ref[...] += jnp.sum(x.astype(jnp.float32), axis=1)    # (TN, H)

    @pl.when(k == pl.num_programs(1) - 1)
    def _():
        s = acc_ref[...]                                       # (TN, H)
        # Linear(H, H) + LeakyReLU(0.01): bf16 MXU inputs, f32 accumulate.
        h = jnp.dot(s.astype(jnp.bfloat16), w1_ref[...],
                    preferred_element_type=jnp.float32) + b1_ref[...]
        h = jnp.where(h >= 0.0, h, NEG_SLOPE * h)
        # Linear(H, 1) padded to LANE columns -> unmasked, full-lane store.
        v = jnp.dot(h.astype(jnp.bfloat16), w2_ref[...],
                    preferred_element_type=jnp.float32) + b2_ref[...]
        out_ref[...] = v                                       # (TN, LANE)


def _choose_tiles(N, P, itemsize, target_block_bytes):
    # N tile: MXU-friendly 256 when N is large, clamped (8-aligned) otherwise.
    tn = min(256, _round_up(N, 8))
    if _cdiv(N, tn) < 2 and N > 8:
        # v7x megacore: guarantee >= 2 blocks on the "parallel" N axis so both
        # TensorCores get work (harmless on single-TC v5e/v6e).
        tn = _round_up(_cdiv(N, 2), 8)
    # P tile: scale so each x block sits near the target (~8 MiB) -> the
    # ~0.35 us per-grid-step overhead stops mattering on all generations.
    row_bytes = tn * HID * itemsize
    tp = (target_block_bytes // row_bytes) // 8 * 8
    tp = max(8, min(tp, _round_up(P, 8)))
    return tn, tp


def vjoint_forward_batched(x, w1, b1, w2, b2, *, target_block_bytes=8 << 20):
    """x: (N, P, H) stacked pair encodings -> (N, 1) f32 values.

    Weights are stored (in, out): w1 (H, H), b1 (H,), w2 (H, 1), b2 (1,).
    NOTE: PyTorch nn.Linear.weight is (out, in) and computes x @ W.T --
    transpose PyTorch weights before passing them here.
    x may be float32 or bfloat16 (bf16 halves the dominant HBM read traffic;
    the pair-sum accumulator stays f32 either way).
    """
    N, P, H = x.shape
    assert H == HID

    w1f = w1.astype(jnp.float32)
    b1f = b1.reshape(1, H).astype(jnp.float32)
    w2f = w2.reshape(H, 1).astype(jnp.float32)
    b2f = jnp.reshape(b2, (1, 1)).astype(jnp.float32)

    if N == 0 or P == 0:
        # Degenerate: sum over an empty pair axis is all-zeros (PyTorch
        # semantics).  An empty grid axis is invalid, so compute directly.
        s = jnp.zeros((N, H), jnp.float32)
        h = s @ w1f + b1f
        h = jnp.where(h >= 0.0, h, NEG_SLOPE * h)
        return h @ w2f + b2f                                    # (N, 1)

    tn, tp = _choose_tiles(N, P, x.dtype.itemsize, target_block_bytes)
    n_blocks, p_blocks = _cdiv(N, tn), _cdiv(P, tp)
    # x is never padded / copied in HBM.  Ragged tail tiles simply overhang:
    # the P tail is masked inside the kernel; the N tail rows produce junk
    # output rows that are sliced off below.  Only the (tiny, LANE-wide)
    # output buffer is allocated padded so its stores are always in-bounds.
    n_out = n_blocks * tn

    # bf16 weights for the MXU; sums / biases / accumulation stay f32.
    w1_bf = w1f.astype(jnp.bfloat16)                            # (H, H)
    w2_bf = jnp.zeros((H, LANE), jnp.bfloat16).at[:, 0].set(
        w2f[:, 0].astype(jnp.bfloat16))                         # lane-dense
    b2_r = jnp.zeros((1, LANE), jnp.float32).at[0, 0].set(b2f[0, 0])

    # VMEM budget: double-buffered x blocks + resident weights + acc + out.
    x_block = tn * tp * H * x.dtype.itemsize
    est = (2 * x_block
           + 2 * ((H * H + H * LANE) * 2 + (H + LANE) * 4)      # weights/biases
           + 2 * tn * LANE * 4                                  # output tile
           + tn * H * 4)                                        # accumulator
    vmem_limit = max(16 << 20, min(56 << 20, int(est * 1.5) + (4 << 20)))

    kernel = functools.partial(_vjoint_kernel, p_total=P, tp=tp)
    out = pl.pallas_call(
        kernel,
        out_shape=jax.ShapeDtypeStruct((n_out, LANE), jnp.float32),
        grid=(n_blocks, p_blocks),
        in_specs=[
            pl.BlockSpec((tn, tp, H), lambda i, k: (i, k, 0)),
            # Weights / biases: constant index_map -> fetched once, resident.
            # (pipeline_mode=pl.Buffered(1) would drop the dead second buffer
            #  (<1 MiB); skipped for wider JAX-version compatibility.)
            pl.BlockSpec((H, H), lambda i, k: (0, 0)),
            pl.BlockSpec((1, H), lambda i, k: (0, 0)),
            pl.BlockSpec((H, LANE), lambda i, k: (0, 0)),
            pl.BlockSpec((1, LANE), lambda i, k: (0, 0)),
        ],
        # N axis independent -> "parallel" (megacore-shardable on v7x); the P
        # axis reduces into acc_ref -> trailing "arbitrary" axis.
        out_specs=pl.BlockSpec((tn, LANE), lambda i, k: (i, 0)),
        scratch_shapes=[pltpu.VMEM((tn, H), jnp.float32)],
        compiler_params=pltpu.CompilerParams(
            dimension_semantics=("parallel", "arbitrary"),
            vmem_limit_bytes=vmem_limit),
    )(x, w1_bf, b1f, w2_bf, b2_r)

    return out[:N, 0:1]                                         # (N, 1)


def vjoint_forward(n_pair_enc, w1, b1, w2, b2, **kw):
    """Matches the PyTorch forward: returns a list of (1,)-shaped values."""
    if len(n_pair_enc) == 0:
        return []
    # TODO(synk): ragged per-pair lengths (different P per pair_enc) would need
    # per-group offsets + scalar prefetch; this path assumes equal P and stacks.
    x = jnp.stack(n_pair_enc, axis=0)                            # (N, P, H)
    out = vjoint_forward_batched(x, w1, b1, w2, b2, **kw)        # (N, 1)
    # Single split outside the hot path (instead of N tiny device slices).
    return list(out)


def vjoint_reference(n_pair_enc, w1, b1, w2, b2):
    outs = []
    for pe in n_pair_enc:
        s = pe.sum(axis=0)                                       # (H,)
        h = s @ w1 + b1
        h = jnp.where(h >= 0.0, h, NEG_SLOPE * h)
        v = h @ w2.reshape(-1) + b2
        outs.append(jnp.reshape(v, (1,)))
    return outs


if __name__ == "__main__":
    key = jax.random.PRNGKey(0)
    k1, k2, k3, k4, kx = jax.random.split(key, 5)

    # Deterministic synthetic parameters for nn.Linear(512,512) / nn.Linear(512,1),
    # stored (in, out) (i.e. already transposed from PyTorch's (out, in)).
    w1 = jax.random.normal(k1, (HID, HID), jnp.float32) * 0.02
    b1 = jax.random.normal(k2, (HID,), jnp.float32) * 0.02
    w2 = jax.random.normal(k3, (HID, 1), jnp.float32) * 0.02
    b2 = jax.random.normal(k4, (1,), jnp.float32) * 0.02

    # Case 1: N=5, P=12  -> ragged N and P tails (exercises the in-kernel P mask).
    # Case 2: N=17, P=40 -> >= 2 blocks along the "parallel" N axis.
    for case, (N, P) in enumerate([(5, 12), (17, 40)]):
        n_pair_enc = [
            jax.random.normal(jax.random.fold_in(kx, 100 * case + i),
                              (P, HID), jnp.float32)
            for i in range(N)
        ]

        vtot = vjoint_forward(n_pair_enc, w1, b1, w2, b2)
        vtot = [jax.block_until_ready(v) for v in vtot]

        ref = vjoint_reference(n_pair_enc, w1, b1, w2, b2)
        for got, want in zip(vtot, ref):
            assert got.shape == (1,)
            # bf16 MXU inputs (f32 accumulate) -> looser tolerance than pure f32.
            assert jnp.allclose(got, want, atol=2e-2, rtol=2e-2), (got, want)

    print("KERNEL_OK")
</pallas_src>

<mosaic_0001>
module attributes {stable_mosaic.version = 11 : i64} {
  func.func @_vjoint_kernel(%arg0: i32, %arg1: i32, %arg2: memref<8x16x512xf32, #tpu.memory_space<vmem>>, %arg3: memref<512x512xbf16, #tpu.memory_space<vmem>>, %arg4: memref<1x512xf32, #tpu.memory_space<vmem>>, %arg5: memref<512x128xbf16, #tpu.memory_space<vmem>>, %arg6: memref<1x128xf32, #tpu.memory_space<vmem>>, %arg7: memref<8x128xf32, #tpu.memory_space<vmem>>, %arg8: memref<8x512xf32, #tpu.memory_space<vmem>>) attributes {dimension_semantics = [#tpu.dimension_semantics<parallel>, #tpu.dimension_semantics<arbitrary>], iteration_bounds = array<i64: 1, 1>, scalar_prefetch = 0 : i64, scratch_operands = 1 : i64, tpu.core_type = #tpu.core_type<tc>, window_params = [{transform_indices = @transform_0, window_bounds = array<i64: 8, 16, 512>}, {pipeline_mode = #tpu.pipeline_mode<synchronous>, transform_indices = @transform_1, window_bounds = array<i64: 512, 512>}, {pipeline_mode = #tpu.pipeline_mode<synchronous>, transform_indices = @transform_2, window_bounds = array<i64: 1, 512>}, {pipeline_mode = #tpu.pipeline_mode<synchronous>, transform_indices = @transform_3, window_bounds = array<i64: 512, 128>}, {pipeline_mode = #tpu.pipeline_mode<synchronous>, transform_indices = @transform_4, window_bounds = array<i64: 1, 128>}, {transform_indices = @transform_5, window_bounds = array<i64: 8, 128>}]} {
    %c0_i32 = arith.constant 0 : i32
    %0 = arith.cmpi eq, %arg1, %c0_i32 : i32
    %1 = arith.extui %0 : i1 to i32
    %c0_i32_0 = arith.constant 0 : i32
    %2 = arith.cmpi ne, %1, %c0_i32_0 : i32
    scf.if %2 {
      %cst_10 = arith.constant 0.000000e+00 : f32
      %19 = vector.broadcast %cst_10 : f32 to vector<8x512xf32>
      %c0_11 = arith.constant 0 : index
      %c0_12 = arith.constant 0 : index
      %20 = vector.load %arg8[%c0_11, %c0_12] : memref<8x512xf32, #tpu.memory_space<vmem>>, vector<8x512xf32>
      tpu.vector_store %arg8[%c0_11, %c0_12], %19 {strides = array<i32>} : memref<8x512xf32, #tpu.memory_space<vmem>>, vector<8x512xf32>,
    } else {
    }
    %c0 = arith.constant 0 : index
    %c0_1 = arith.constant 0 : index
    %c0_2 = arith.constant 0 : index
    %3 = vector.load %arg2[%c0, %c0_1, %c0_2] : memref<8x16x512xf32, #tpu.memory_space<vmem>>, vector<8x16x512xf32>
    %c16_i32 = arith.constant 16 : i32
    %4 = arith.muli %arg1, %c16_i32 : i32
    %c12_i32 = arith.constant 12 : i32
    %5 = arith.subi %c12_i32, %4 : i32
    %6 = tpu.iota {dimensions = array<i32: 1>} : vector<8x16x512xi32>
    %7 = vector.broadcast %5 : i32 to vector<8x16x512xi32>
    %8 = arith.cmpi slt, %6, %7 : vector<8x16x512xi32>
    %c0_i32_3 = arith.constant 0 : i32
    %9 = arith.sitofp %c0_i32_3 : i32 to f32
    %10 = vector.broadcast %9 : f32 to vector<8x16x512xf32>
    %11 = arith.select %8, %3, %10 : vector<8x16x512xi1>, vector<8x16x512xf32>
    %c0_4 = arith.constant 0 : index
    %c0_5 = arith.constant 0 : index
    %12 = vector.load %arg8[%c0_4, %c0_5] : memref<8x512xf32, #tpu.memory_space<vmem>>, vector<8x512xf32>
    %cst = arith.constant dense<0.000000e+00> : vector<8x512xf32>
    %13 = vector.multi_reduction <add>, %11, %cst [1] : vector<8x16x512xf32> to vector<8x512xf32>
    %14 = arith.addf %12, %13 : vector<8x512xf32>
    %c0_6 = arith.constant 0 : index
    %c0_7 = arith.constant 0 : index
    %15 = vector.load %arg8[%c0_6, %c0_7] : memref<8x512xf32, #tpu.memory_space<vmem>>, vector<8x512xf32>
    tpu.vector_store %arg8[%c0_6, %c0_7], %14 {strides = array<i32>} : memref<8x512xf32, #tpu.memory_space<vmem>>, vector<8x512xf32>,
    %c0_i32_8 = arith.constant 0 : i32
    %16 = arith.cmpi eq, %arg1, %c0_i32_8 : i32
    %17 = arith.extui %16 : i1 to i32
    %c0_i32_9 = arith.constant 0 : i32
    %18 = arith.cmpi ne, %17, %c0_i32_9 : i32
    scf.if %18 {
      %c0_10 = arith.constant 0 : index
      %c0_11 = arith.constant 0 : index
      %19 = vector.load %arg8[%c0_10, %c0_11] : memref<8x512xf32, #tpu.memory_space<vmem>>, vector<8x512xf32>
      %20 = arith.truncf %19 : vector<8x512xf32> to vector<8x512xbf16>
      %c0_12 = arith.constant 0 : index
      %c0_13 = arith.constant 0 : index
      %21 = vector.load %arg3[%c0_12, %c0_13] : memref<512x512xbf16, #tpu.memory_space<vmem>>, vector<512x512xbf16>
      %cst_14 = arith.constant dense<0.000000e+00> : vector<8x512xf32>
      %22 = tpu.matmul %20, %21, %cst_14 {dimension_numbers = #tpu.dot_dimension_numbers<[1], [0], [0], [1], [0, 0, 1, 1], [], []>} : vector<8x512xbf16>, vector<512x512xbf16>, vector<8x512xf32> -> vector<8x512xf32>
      %c0_15 = arith.constant 0 : index
      %c0_16 = arith.constant 0 : index
      %23 = vector.load %arg4[%c0_15, %c0_16] : memref<1x512xf32, #tpu.memory_space<vmem>>, vector<1x512xf32>
      %24 = vector.broadcast %23 : vector<1x512xf32> to vector<8x512xf32>
      %25 = arith.addf %22, %24 : vector<8x512xf32>
      %cst_17 = arith.constant 0.000000e+00 : f32
      %26 = vector.broadcast %cst_17 : f32 to vector<8x512xf32>
      %27 = arith.cmpf oge, %25, %26 : vector<8x512xf32>
      %cst_18 = arith.constant 0.00999999977 : f32
      %28 = vector.broadcast %cst_18 : f32 to vector<8x512xf32>
      %29 = arith.mulf %28, %25 : vector<8x512xf32>
      %30 = arith.select %27, %25, %29 : vector<8x512xi1>, vector<8x512xf32>
      %31 = arith.truncf %30 : vector<8x512xf32> to vector<8x512xbf16>
      %c0_19 = arith.constant 0 : index
      %c0_20 = arith.constant 0 : index
      %32 = vector.load %arg5[%c0_19, %c0_20] : memref<512x128xbf16, #tpu.memory_space<vmem>>, vector<512x128xbf16>
      %cst_21 = arith.constant dense<0.000000e+00> : vector<8x128xf32>
      %33 = tpu.matmul %31, %32, %cst_21 {dimension_numbers = #tpu.dot_dimension_numbers<[1], [0], [0], [1], [0, 0, 1, 1], [], []>} : vector<8x512xbf16>, vector<512x128xbf16>, vector<8x128xf32> -> vector<8x128xf32>
      %c0_22 = arith.constant 0 : index
      %c0_23 = arith.constant 0 : index
      %34 = vector.load %arg6[%c0_22, %c0_23] : memref<1x128xf32, #tpu.memory_space<vmem>>, vector<1x128xf32>
      %35 = vector.broadcast %34 : vector<1x128xf32> to vector<8x128xf32>
      %36 = arith.addf %33, %35 : vector<8x128xf32>
      %c0_24 = arith.constant 0 : index
      %c0_25 = arith.constant 0 : index
      %37 = vector.load %arg7[%c0_24, %c0_25] : memref<8x128xf32, #tpu.memory_space<vmem>>, vector<8x128xf32>
      tpu.vector_store %arg7[%c0_24, %c0_25], %36 {strides = array<i32>} : memref<8x128xf32, #tpu.memory_space<vmem>>, vector<8x128xf32>,
    } else {
    }
    return
  }
  func.func @transform_0(%arg0: i32, %arg1: i32) -> (i32, i32, i32) {
    %c0_i32 = arith.constant 0 : i32
    %c0_i32_0 = arith.constant 0 : i32
    return %arg0, %arg1, %c0_i32 : i32, i32, i32
  }
  func.func @transform_1(%arg0: i32, %arg1: i32) -> (i32, i32) {
    %c0_i32 = arith.constant 0 : i32
    %c0_i32_0 = arith.constant 0 : i32
    %c0_i32_1 = arith.constant 0 : i32
    return %c0_i32, %c0_i32_0 : i32, i32
  }
  func.func @transform_2(%arg0: i32, %arg1: i32) -> (i32, i32) {
    %c0_i32 = arith.constant 0 : i32
    %c0_i32_0 = arith.constant 0 : i32
    %c0_i32_1 = arith.constant 0 : i32
    return %c0_i32, %c0_i32_0 : i32, i32
  }
  func.func @transform_3(%arg0: i32, %arg1: i32) -> (i32, i32) {
    %c0_i32 = arith.constant 0 : i32
    %c0_i32_0 = arith.constant 0 : i32
    %c0_i32_1 = arith.constant 0 : i32
    return %c0_i32, %c0_i32_0 : i32, i32
  }
  func.func @transform_4(%arg0: i32, %arg1: i32) -> (i32, i32) {
    %c0_i32 = arith.constant 0 : i32
    %c0_i32_0 = arith.constant 0 : i32
    %c0_i32_1 = arith.constant 0 : i32
    return %c0_i32, %c0_i32_0 : i32, i32
  }
  func.func @transform_5(%arg0: i32, %arg1: i32) -> (i32, i32) {
    %c0_i32 = arith.constant 0 : i32
    %c0_i32_0 = arith.constant 0 : i32
    return %arg0, %c0_i32 : i32, i32
  }
}

</mosaic_0001>

<bundles_post_ra>
// kernel: tpu_custom_call.1
= control target key start
LH: loop header
LB: loop body
LE: loop exit
PB: predicated region body
PF: predicated region fallthrough
CT: control target
= control target key end

     0   :  { %10 = vsyncpa [#allocation4], 0  ;;  %s2593_s0 = inlined_call_operand.hbm [shape: f32[5,12,512], index: 0, kind: input, shape index: {}]   ;;  %s2594_s1 = inlined_call_operand.hbm [shape: bf16[512,512], index: 1, kind: input, shape index: {}]   ;;  %s2595_s2 = inlined_call_operand.hbm [shape: f32[1,512], index: 2, kind: input, shape index: {}]   ;;  %s2596_s3 = inlined_call_operand.hbm [shape: bf16[512,128], index: 3, kind: input, shape index: {}]   ;;  %s2597_s4 = inlined_call_operand.vmem [shape: f32[1,128], index: 4, kind: input, shape index: {}]   ;;  %s2598_s5 = inlined_call_operand.hbm [shape: f32[8,128], index: 5, kind: output, shape index: {}]  }
   0x1   :  { %11 = vsyncpa [#allocation7], 0 }
   0x2   :  { %12 = vsyncpa [#allocation10], 0 }
   0x3   :  { %13 = vsyncpa [#allocation5], 0 }
   0x4   :  { %18 = vsyncadd [#allocation4], 3072  ;;  %s2416_s18 = smov [#allocation6]  }
   0x5   :  { %s31_s19 = sshll.u32 %s2416_s18, 4  ;;  %s32_s19 = int_to_ptr.vmem [resolvable:$true] %s31_s19 }
   0x6   :  { %s2316_s20 = scalar_lea.vmem %s32_s19, 16384  ;;  %p2321_p1 = scmp.lt.s32.totalorder %s32_s19, %s32_s19 }
   0x7   :  { %p2317_p0 = scmp.ne.s32.totalorder %s32_s19, %s2316_s20  ;;  %p2322_p2 = scmp.lt.s32.totalorder %s2316_s20, %s2316_s20 }
   0x9   :  { %p2323_p3 = por %p2322_p2, %p2321_p1 }
   0xb   :  { %p2324_p4 = pnand %p2323_p3, %p2317_p0 }
   0xd   :  { %2327 = shalt.err (!%p2324_p4)
}
   0xe   :  { %s2417_s21 = smov 256   ;;  %s2418_s22 = smov 16  }
   0xf   :  { %37 = dma.hbm_to_vmem [thread:$0]  %s2594_s1, 16384, %s32_s19, [#allocation7], %s2417_s21, %s2417_s21, %s2418_s22  }
  0x10   :  { %s2419_s25 = smov [#allocation3]  }
  0x11   :  { %s19_s26 = sshll.u32 %s2419_s25, 4  ;;  %s20_s26 = int_to_ptr.vmem [resolvable:$true] %s19_s26 }
  0x12   :  { %s2336_s27 = scalar_lea.vmem %s20_s26, 5120  ;;  %s2340_s28 = scalar_lea.vmem %s20_s26, 8192 }
  0x13   :  { %p2337_p5 = scmp.ne.s32.totalorder %s20_s26, %s2336_s27  ;;  %p2341_p6 = scmp.lt.s32.totalorder %s20_s26, %s20_s26 }
  0x14   :  { %p2342_p7 = scmp.lt.s32.totalorder %s2340_s28, %s2336_s27 }
  0x16   :  { %p2343_p8 = por %p2342_p7, %p2341_p6 }
  0x18   :  { %p2344_p9 = pnand %p2343_p8, %p2337_p5 }
  0x1a   :  { %2347 = shalt.err (!%p2344_p9)
}
  0x1b   :  { %s2420_s29 = smov 512   ;;  %s2421_s30 = smov 32  }
  0x1c   :  { %25 = dma.hbm_to_vmem [thread:$0]  %s2593_s0, 5120, %s20_s26, [#allocation4], %s2420_s29, %s2420_s29, %s2421_s30  }
  0x1d   :  { %s2422_s8 = smov [#allocation8]   ;;  %s2423_s1 = smov [#allocation9]  }
  0x1e   :  { %s44_s9 = sshll.u32 %s2422_s8, 4  ;;  %s53_s10 = sshll.u32 %s2423_s1, 4  ;;  %s45_s9 = int_to_ptr.vmem [resolvable:$true] %s44_s9  ;;  %s54_s10 = int_to_ptr.vmem [resolvable:$true] %s53_s10 }
  0x1f   :  { %s2356_s11 = scalar_lea.vmem %s45_s9, 64  ;;  %p2361_p11 = scmp.lt.s32.totalorder %s45_s9, %s45_s9 }
  0x20   :  { %p2357_p10 = scmp.ne.s32.totalorder %s45_s9, %s2356_s11  ;;  %p2362_p12 = scmp.lt.s32.totalorder %s2356_s11, %s2356_s11 }
  0x22   :  { %p2363_p13 = por %p2362_p12, %p2361_p11 }
  0x24   :  { %p2364_p0 = pnand %p2363_p13, %p2357_p10 }
  0x26   :  { %2367 = shalt.err (!%p2364_p0)
}
  0x27   :  { %47 = dma.hbm_to_vmem [thread:$0]  %s2595_s2, 64, %s45_s9, [#allocation7]  }
  0x28   :  { %s2376_s14 = scalar_lea.vmem %s54_s10, 4096  ;;  %p2381_p2 = scmp.lt.s32.totalorder %s54_s10, %s54_s10 }
  0x29   :  { %p2377_p1 = scmp.ne.s32.totalorder %s54_s10, %s2376_s14  ;;  %p2382_p3 = scmp.lt.s32.totalorder %s2376_s14, %s2376_s14 }
  0x2b   :  { %p2383_p4 = por %p2382_p3, %p2381_p2 }
  0x2d   :  { %p2384_p5 = pnand %p2383_p4, %p2377_p1 }
  0x2f   :  { %2387 = shalt.err (!%p2384_p5)
}
  0x30   :  { %s2424_s0 = smov 64   ;;  %s2425_s15 = smov 4  }
  0x31   :  { %59 = dma.hbm_to_vmem [thread:$0]  %s2596_s3, 4096, %s54_s10, [#allocation10], %s2424_s0, %s2424_s0, %s2425_s15  }
  0x32   :  { %2408 = dma.done.wait [#allocation4], 8192  }
  0x33   :  { %2409 = vsyncadd [#allocation4], 4294959104 }
  0x34   :  { %2410 = dma.done.wait [#allocation7], 16448  }
  0x35   :  { %2411 = vsyncadd [#allocation7], 4294950848 }
  0x36   :  { %2412 = dma.done.wait [#allocation10], 4096  }
  0x37   :  { %2413 = vsyncadd [#allocation10], 4294963200  ;;  %v2084_v0 = vld [vmem:[#allocation6 + $0xe4] ss:$16 sps:$4 sm:$0xff]   ;;  %v2088_v2 = vld [vmem:[#allocation6 + $0xe0] ss:$16 sps:$4 sm:$0xff]   ;;  %v149_v34 = vlaneseq }
  0x38   :  { %v2086_v1 = vld [vmem:[#allocation6 + $0x2e4] ss:$16 sps:$4 sm:$0xff]   ;;  %1327 = vmatprep.subr.bf16.mxu0 %v2084_v0  ;;  %v2089_v3 = vld [vmem:[#allocation6 + $0x2e0] ss:$16 sps:$4 sm:$0xff]   ;;  %v84_v51 = vld [vmem:[#allocation3 + $0x8] sm:$0xff]  ;;  %vm479_vm1 = vcmask 1041409  }
  0x39   :  { %1368 = vmatprep.subr.bf16.mxu1 %v2086_v1  ;;  %v2090_v4 = vld [vmem:[#allocation6 + $0xc4] ss:$16 sps:$4 sm:$0xff]   ;;  %1328 = vmatpush1.bf16.msra.mxu0 %v2088_v2  ;;  %v2094_v6 = vld [vmem:[#allocation6 + $0xc0] ss:$16 sps:$4 sm:$0xff]   ;;  %v2469_v39 = vshrl.u32 %v149_v34, 7  ;;  %v88_v54 = vld [vmem:[#allocation3 + $0x28] sm:$0xff] }
  0x3a   :  { %1369 = vmatpush1.bf16.msra.mxu1 %v2089_v3  ;;  %v2092_v5 = vld [vmem:[#allocation6 + $0x2c4] ss:$16 sps:$4 sm:$0xff]   ;;  %1329 = vmatprep.subr.bf16.mxu0 %v2090_v4  ;;  %v2095_v7 = vld [vmem:[#allocation6 + $0x2c0] ss:$16 sps:$4 sm:$0xff]   ;;  %v92_v55 = vld [vmem:[#allocation3 + $0x48] sm:$0xff]  ;;  %vm481_vm2 = vcmask 1042434  }
  0x3b   :  { %1370 = vmatprep.subr.bf16.mxu1 %v2092_v5  ;;  %v2096_v8 = vld [vmem:[#allocation6 + $0xa4] ss:$16 sps:$4 sm:$0xff]   ;;  %v2100_v10 = vld [vmem:[#allocation6 + $0xa0] ss:$16 sps:$4 sm:$0xff]   ;;  %v2472_v44 = vadd.s32 8, %v2469_v39  ;;  %v96_v56 = vld [vmem:[#allocation3 + $0x68] sm:$0xff] }
  0x3c   :  { %v2098_v9 = vld [vmem:[#allocation6 + $0x2a4] ss:$16 sps:$4 sm:$0xff]   ;;  %v2101_v11 = vld [vmem:[#allocation6 + $0x2a0] ss:$16 sps:$4 sm:$0xff]   ;;  %v100_v57 = vld [vmem:[#allocation3 + $0x88] sm:$0xff]  ;;  %vm483_vm3 = vcmask 1043459  }
  0x3d   :  { %1330 = vmatpush1.bf16.msra.mxu0 %v2094_v6  ;;  %v2102_v12 = vld [vmem:[#allocation6 + $0x84] ss:$16 sps:$4 sm:$0xff]   ;;  %v2106_v14 = vld [vmem:[#allocation6 + $0x80] ss:$16 sps:$4 sm:$0xff]   ;;  %vm154_vm0 = vcmp.lt.s32.totalorder %v2472_v44, 12  ;;  %v104_v58 = vld [vmem:[#allocation3 + $0xa8] sm:$0xff] }
  0x3e   :  { %1371 = vmatpush1.bf16.msra.mxu1 %v2095_v7  ;;  %1331 = vmatprep.subr.bf16.mxu0 %v2096_v8  ;;  %v2104_v13 = vld [vmem:[#allocation6 + $0x284] ss:$16 sps:$4 sm:$0xff]   ;;  %v2107_v15 = vld [vmem:[#allocation6 + $0x280] ss:$16 sps:$4 sm:$0xff]   ;;  %v108_v59 = vld [vmem:[#allocation3 + $0xc8] sm:$0xff]  ;;  %v160_v60 = vsel %vm154_vm0, %v88_v54, 0.0 }
  0x3f   :  { %1372 = vmatprep.subr.bf16.mxu1 %v2098_v9  ;;  %v2108_v16 = vld [vmem:[#allocation6 + $0x64] ss:$16 sps:$4 sm:$0xff]   ;;  %v2112_v18 = vld [vmem:[#allocation6 + $0x60] ss:$16 sps:$4 sm:$0xff]   ;;  %v168_v61 = vsel %vm154_vm0, %v96_v56, 0.0  ;;  %v112_v62 = vld [vmem:[#allocation3 + $0xe8] sm:$0xff]  ;;  %v230_v2 = vadd.f32 %v160_v60, %v84_v51 }
  0x40   :  { %v2110_v17 = vld [vmem:[#allocation6 + $0x264] ss:$16 sps:$4 sm:$0xff]   ;;  %v2113_v19 = vld [vmem:[#allocation6 + $0x260] ss:$16 sps:$4 sm:$0xff]   ;;  %v116_v63 = vld [vmem:[#allocation3 + $0x108] sm:$0xff]  ;;  %v176_v1 = vsel %vm154_vm0, %v104_v58, 0.0  ;;  %v258_v3 = vadd.f32 %v168_v61, %v92_v55 }
  0x41   :  { %1332 = vmatpush1.bf16.msra.mxu0 %v2100_v10  ;;  %v2114_v20 = vld [vmem:[#allocation6 + $0x44] ss:$16 sps:$4 sm:$0xff]   ;;  %v2118_v22 = vld [vmem:[#allocation6 + $0x40] ss:$16 sps:$4 sm:$0xff]   ;;  %v120_v0 = vld [vmem:[#allocation3 + $0x128] sm:$0xff]  ;;  %v184_v8 = vsel %vm154_vm0, %v112_v62, 0.0  ;;  %v286_v10 = vadd.f32 %v176_v1, %v100_v57 }
  0x42   :  { %1373 = vmatpush1.bf16.msra.mxu1 %v2101_v11  ;;  %1333 = vmatprep.subr.bf16.mxu0 %v2102_v12  ;;  %v2116_v21 = vld [vmem:[#allocation6 + $0x244] ss:$16 sps:$4 sm:$0xff]   ;;  %v2119_v23 = vld [vmem:[#allocation6 + $0x240] ss:$16 sps:$4 sm:$0xff]   ;;  %v124_v5 = vld [vmem:[#allocation3 + $0x148] sm:$0xff]  ;;  %v192_v9 = vsel %vm154_vm0, %v120_v0, 0.0 }
  0x43   :  { %1374 = vmatprep.subr.bf16.mxu1 %v2104_v13  ;;  %v2120_v24 = vld [vmem:[#allocation6 + $0x24] ss:$16 sps:$4 sm:$0xff]   ;;  %v2124_v26 = vld [vmem:[#allocation6 + $0x20] ss:$16 sps:$4 sm:$0xff]   ;;  %v128_v6 = vld [vmem:[#allocation3 + $0x168] sm:$0xff]  ;;  %vm485_vm4 = vcmask 1044484  }
  0x44   :  { %v2122_v25 = vld [vmem:[#allocation6 + $0x224] ss:$16 sps:$4 sm:$0xff]   ;;  %v2125_v27 = vld [vmem:[#allocation6 + $0x220] ss:$16 sps:$4 sm:$0xff]   ;;  %v132_v7 = vld [vmem:[#allocation3 + $0x188] sm:$0xff]  ;;  %vm487_vm5 = vcmask 1045509  }
  0x45   :  { %1334 = vmatpush1.bf16.msra.mxu0 %v2106_v14  ;;  %v2126_v28 = vld [vmem:[#allocation6 + $0x4] ss:$16 sps:$4 sm:$0xff]   ;;  %v2130_v30 = vld [vmem:[#allocation6] ss:$16 sps:$4 sm:$0xff]   ;;  %v136_v11 = vld [vmem:[#allocation3 + $0x1a8] sm:$0xff]  ;;  %v200_v14 = vsel %vm154_vm0, %v128_v6, 0.0 }
  0x46   :  { %1375 = vmatpush1.bf16.msra.mxu1 %v2107_v15  ;;  %1335 = vmatprep.subr.bf16.mxu0 %v2108_v16  ;;  %v2128_v29 = vld [vmem:[#allocation6 + $0x204] ss:$16 sps:$4 sm:$0xff]   ;;  %v2131_v31 = vld [vmem:[#allocation6 + $0x200] ss:$16 sps:$4 sm:$0xff]   ;;  %v140_v12 = vld [vmem:[#allocation3 + $0x1c8] sm:$0xff]  ;;  %v231_v15 = vrot.slane %v230_v2, 4 }
  0x47   :  { %1376 = vmatprep.subr.bf16.mxu1 %v2110_v17  ;;  %v2132_v32 = vld [vmem:[#allocation6 + $0x1e4] ss:$16 sps:$4 sm:$0xff]   ;;  %v2136_v35 = vld [vmem:[#allocation6 + $0x1e0] ss:$16 sps:$4 sm:$0xff]   ;;  %v144_v13 = vld [vmem:[#allocation3 + $0x1e8] sm:$0xff]  ;;  %v259_v16 = vrot.slane %v258_v3, 4  ;;  %v314_v17 = vadd.f32 %v184_v8, %v108_v59 }
  0x48   :  { %v2134_v33 = vld [vmem:[#allocation6 + $0x3e4] ss:$16 sps:$4 sm:$0xff]   ;;  %v2137_v36 = vld [vmem:[#allocation6 + $0x3e0] ss:$16 sps:$4 sm:$0xff]   ;;  %vm489_vm6 = vcmask 1046534   ;;  %vm491_vm7 = vcmask 1047559  }
  0x49   :  { %1336 = vmatpush1.bf16.msra.mxu0 %v2112_v18  ;;  %v2138_v37 = vld [vmem:[#allocation6 + $0x1c4] ss:$16 sps:$4 sm:$0xff]   ;;  %v2142_v40 = vld [vmem:[#allocation6 + $0x1c0] ss:$16 sps:$4 sm:$0xff]   ;;  %v90_v1 = vld [vmem:[#allocation3 + $0x38] sm:$0xff]  ;;  %s2426_s18 = smov [#allocation11]  }
  0x4a   :  { %1377 = vmatpush1.bf16.msra.mxu1 %v2113_v19  ;;  %1337 = vmatprep.subr.bf16.mxu0 %v2114_v20  ;;  %v2140_v38 = vld [vmem:[#allocation6 + $0x3c4] ss:$16 sps:$4 sm:$0xff]   ;;  %v2143_v41 = vld [vmem:[#allocation6 + $0x3c0] ss:$16 sps:$4 sm:$0xff]   ;;  %v208_v19 = vsel %vm154_vm0, %v136_v11, 0.0  ;;  %v216_v20 = vsel %vm154_vm0, %v144_v13, 0.0 }
  0x4b   :  { %1378 = vmatprep.subr.bf16.mxu1 %v2116_v21  ;;  %v2144_v42 = vld [vmem:[#allocation6 + $0x1a4] ss:$16 sps:$4 sm:$0xff]   ;;  %v2148_v45 = vld [vmem:[#allocation6 + $0x1a0] ss:$16 sps:$4 sm:$0xff]   ;;  %v287_v21 = vrot.slane %v286_v10, 4  ;;  %v98_v13 = vld [vmem:[#allocation3 + $0x78] sm:$0xff] }
  0x4c   :  { %v2146_v43 = vld [vmem:[#allocation6 + $0x3a4] ss:$16 sps:$4 sm:$0xff]   ;;  %v2149_v46 = vld [vmem:[#allocation6 + $0x3a0] ss:$16 sps:$4 sm:$0xff]   ;;  %s1857_s19 = sshll.u32 %s2426_s18, 4  ;;  %s1858_s19 = int_to_ptr.vmem [resolvable:$true] %s1857_s19 }
  0x4d   :  { %1338 = vmatpush1.bf16.msra.mxu0 %v2118_v22  ;;  %v2150_v47 = vld [vmem:[#allocation6 + $0x184] ss:$16 sps:$4 sm:$0xff]   ;;  %v2154_v49 = vld [vmem:[#allocation6 + $0x180] ss:$16 sps:$4 sm:$0xff]   ;;  %v342_v22 = vadd.f32 %v192_v9, %v116_v63  ;;  %s2388_s20 = scalar_lea.vmem %s1858_s19, 128  ;;  %p2393_p7 = scmp.lt.s32.totalorder %s1858_s19, %s1858_s19 }
  0x4e   :  { %1379 = vmatpush1.bf16.msra.mxu1 %v2119_v23  ;;  %1339 = vmatprep.subr.bf16.mxu0 %v2120_v24  ;;  %v2152_v48 = vld [vmem:[#allocation6 + $0x384] ss:$16 sps:$4 sm:$0xff]   ;;  %v2155_v50 = vld [vmem:[#allocation6 + $0x380] ss:$16 sps:$4 sm:$0xff]   ;;  %p2389_p6 = scmp.ne.s32.totalorder %s1858_s19, %s2388_s20  ;;  %p2394_p8 = scmp.lt.s32.totalorder %s2388_s20, %s2388_s20 }
  0x4f   :  { %1380 = vmatprep.subr.bf16.mxu1 %v2122_v25  ;;  %v2156_v52 = vld [vmem:[#allocation6 + $0x164] ss:$16 sps:$4 sm:$0xff]   ;;  %v2160_v4 = vld [vmem:[#allocation6 + $0x160] ss:$16 sps:$4 sm:$0xff]   ;;  %v232_v25 = vadd.f32 %v231_v15, %v230_v2 }
  0x50   :  { %v2158_v53 = vld [vmem:[#allocation6 + $0x364] ss:$16 sps:$4 sm:$0xff]   ;;  %v2161_v18 = vld [vmem:[#allocation6 + $0x360] ss:$16 sps:$4 sm:$0xff]   ;;  %p2395_p9 = por %p2394_p8, %p2393_p7 }
  0x51   :  { %1340 = vmatpush1.bf16.msra.mxu0 %v2124_v26  ;;  %v2162_v23 = vld [vmem:[#allocation6 + $0x144] ss:$16 sps:$4 sm:$0xff]   ;;  %v260_v26 = vadd.f32 %v259_v16, %v258_v3  ;;  %v233_v34 = vrot.slane %v232_v25, 2  ;;  %v2172_v55 = vld [vmem:[#allocation6 + $0x120] ss:$16 sps:$4 sm:$0xff]  }
  0x52   :  { %1381 = vmatpush1.bf16.msra.mxu1 %v2125_v27  ;;  %1341 = vmatprep.subr.bf16.mxu0 %v2126_v28  ;;  %v2164_v24 = vld [vmem:[#allocation6 + $0x344] ss:$16 sps:$4 sm:$0xff]   ;;  %v315_v27 = vrot.slane %v314_v17, 4  ;;  %v370_v28 = vadd.f32 %v200_v14, %v124_v5  ;;  %v2173_v60 = vld [vmem:[#allocation6 + $0x320] ss:$16 sps:$4 sm:$0xff]   ;;  %v106_v14 = vld [vmem:[#allocation3 + $0xb8] sm:$0xff]  ;;  %p2396_p10 = pnand %p2395_p9, %p2389_p6 }
  0x53   :  { %1382 = vmatprep.subr.bf16.mxu1 %v2128_v29  ;;  %v288_v29 = vadd.f32 %v287_v21, %v286_v10  ;;  %v2174_v2 = vld [vmem:[#allocation6 + $0x104] ss:$16 sps:$4 sm:$0xff]   ;;  %v2178_v8 = vld [vmem:[#allocation6 + $0x100] ss:$16 sps:$4 sm:$0xff]  }
  0x54   :  { %v2176_v3 = vld [vmem:[#allocation6 + $0x304] ss:$16 sps:$4 sm:$0xff]   ;;  %v2179_v15 = vld [vmem:[#allocation6 + $0x300] ss:$16 sps:$4 sm:$0xff]  }
  0x55   :  { %1342 = vmatpush1.bf16.msra.mxu0 %v2130_v30  ;;  %v343_v30 = vrot.slane %v342_v22, 4 }
  0x56   :  { %1383 = vmatpush1.bf16.msra.mxu1 %v2131_v31  ;;  %1343 = vmatprep.subr.bf16.mxu0 %v2132_v32  ;;  %v398_v31 = vadd.f32 %v208_v19, %v132_v7  ;;  %v426_v32 = vadd.f32 %v216_v20, %v140_v12  ;;  %v114_v19 = vld [vmem:[#allocation3 + $0xf8] sm:$0xff]  ;;  %v162_v20 = vsel %vm154_vm0, %v90_v1, 0.0 }
  0x57   :  { %1384 = vmatprep.subr.bf16.mxu1 %v2134_v33  ;;  %v2166_v33 = vld [vmem:[#allocation6 + $0x140] ss:$16 sps:$4 sm:$0xff]  }
  0x59   :  { %1344 = vmatpush2.bf16.msra.mxu0 %v2136_v35  ;;  %v261_v35 = vrot.slane %v260_v26, 2 }
  0x5a   :  { %1385 = vmatpush2.bf16.msra.mxu1 %v2137_v36  ;;  %1345 = vmatprep.subr.bf16.mxu0 %v2138_v37  ;;  %v316_v36 = vadd.f32 %v315_v27, %v314_v17  ;;  %v371_v37 = vrot.slane %v370_v28, 4  ;;  %v138_v27 = vld [vmem:[#allocation3 + $0x1b8] sm:$0xff] }
  0x5b   :  { %1386 = vmatprep.subr.bf16.mxu1 %v2140_v38  ;;  %v2167_v38 = vld [vmem:[#allocation6 + $0x340] ss:$16 sps:$4 sm:$0xff]  }
  0x5d   :  { %1346 = vmatpush2.bf16.msra.mxu0 %v2142_v40  ;;  %v289_v40 = vrot.slane %v288_v29, 2 }
  0x5e   :  { %1387 = vmatpush2.bf16.msra.mxu1 %v2143_v41  ;;  %1347 = vmatprep.subr.bf16.mxu0 %v2144_v42  ;;  %v344_v41 = vadd.f32 %v343_v30, %v342_v22  ;;  %v399_v42 = vrot.slane %v398_v31, 4  ;;  %v86_v30 = vld [vmem:[#allocation3 + $0x18] sm:$0xff] }
  0x5f   :  { %1388 = vmatprep.subr.bf16.mxu1 %v2146_v43  ;;  %v427_v43 = vrot.slane %v426_v32, 4  ;;  %v290_v51 = vadd.f32 %v289_v40, %v288_v29  ;;  %v110_v40 = vld [vmem:[#allocation3 + $0xd8] sm:$0xff] }
  0x61   :  { %1348 = vmatpush2.bf16.msra.mxu0 %v2148_v45  ;;  %v2168_v45 = vld [vmem:[#allocation6 + $0x124] ss:$16 sps:$4 sm:$0xff]   ;;  %v428_v54 = vadd.f32 %v427_v43, %v426_v32  ;;  %v291_v61 = vrot.slane %v290_v51, 1  ;;  %v146_v32 = vld [vmem:[#allocation3 + $0x1f8] sm:$0xff] }
  0x62   :  { %1389 = vmatpush2.bf16.msra.mxu1 %v2149_v46  ;;  %1349 = vmatprep.subr.bf16.mxu0 %v2150_v47  ;;  %v2170_v46 = vld [vmem:[#allocation6 + $0x324] ss:$16 sps:$4 sm:$0xff]   ;;  %v234_v47 = vadd.f32 %v233_v34, %v232_v25  ;;  %v122_v25 = vld [vmem:[#allocation3 + $0x138] sm:$0xff]  ;;  %v178_v34 = vsel %vm154_vm0, %v106_v14, 0.0 }
  0x63   :  { %1390 = vmatprep.subr.bf16.mxu1 %v2152_v48  ;;  %v262_v48 = vadd.f32 %v261_v35, %v260_v26  ;;  %v429_v0 = vrot.slane %v428_v54, 2  ;;  %v292_v9 = vadd.f32 %v291_v61, %v290_v51  ;;  %v130_v26 = vld [vmem:[#allocation3 + $0x178] sm:$0xff] }
  0x64   :  { %v235_v56 = vrot.slane %v234_v47, 1  ;;  %v142_v51 = vld [vmem:[#allocation3 + $0x1d8] sm:$0xff] }
  0x65   :  { %1350 = vmatpush2.bf16.msra.mxu0 %v2154_v49  ;;  %v317_v49 = vrot.slane %v316_v36, 2  ;;  %v263_v57 = vrot.slane %v262_v48, 1  ;;  %v430_v12 = vadd.f32 %v429_v0, %v428_v54  ;;  %v2185_v0 = vld [vmem:[#allocation6 + $0x2ec] ss:$16 sps:$4 sm:$0xff]  }
  0x66   :  { %1391 = vmatpush2.bf16.msra.mxu1 %v2155_v50  ;;  %1351 = vmatprep.subr.bf16.mxu0 %v2156_v52  ;;  %v372_v50 = vadd.f32 %v371_v37, %v370_v28  ;;  %v345_v52 = vrot.slane %v344_v41, 2 }
  0x67   :  { %1392 = vmatprep.subr.bf16.mxu1 %v2158_v53  ;;  %v400_v53 = vadd.f32 %v399_v42, %v398_v31  ;;  %v318_v58 = vadd.f32 %v317_v49, %v316_v36  ;;  %v264_v5 = vadd.f32 %v263_v57, %v262_v48  ;;  %v94_v31 = vld [vmem:[#allocation3 + $0x58] sm:$0xff]  ;;  %v186_v42 = vsel %vm154_vm0, %v114_v19, 0.0 }
  0x68   :  { %v373_v59 = vrot.slane %v372_v50, 2  ;;  %v346_v62 = vadd.f32 %v345_v52, %v344_v41  ;;  %v118_v41 = vld [vmem:[#allocation3 + $0x118] sm:$0xff]  ;;  %v202_v48 = vsel %vm154_vm0, %v130_v26, 0.0  ;;  %v210_v49 = vsel %vm154_vm0, %v138_v27, 0.0 }
  0x69   :  { %1352 = vmatpush2.bf16.msra.mxu0 %v2160_v4  ;;  %v401_v63 = vrot.slane %v400_v53, 2  ;;  %v236_v4 = vadd.f32 %v235_v56, %v234_v47  ;;  %v319_v6 = vrot.slane %v318_v58, 1  ;;  %v194_v47 = vsel %vm154_vm0, %v122_v25, 0.0 }
  0x6a   :  { %1393 = vmatpush2.bf16.msra.mxu1 %v2161_v18  ;;  %1353 = vmatprep.subr.bf16.mxu0 %v2162_v23  ;;  %v374_v7 = vadd.f32 %v373_v59, %v372_v50  ;;  %v347_v10 = vrot.slane %v346_v62, 1  ;;  %v431_v23 = vrot.slane %v430_v12, 1  ;;  %v218_v52 = vsel %vm154_vm0, %v146_v32, 0.0  ;;  %v2182_v59 = vld [vmem:[#allocation6 + $0xec] ss:$16 sps:$4 sm:$0xff]  }
  0x6b   :  { %1394 = vmatprep.subr.bf16.mxu1 %v2164_v24  ;;  %v402_v11 = vadd.f32 %v401_v63, %v400_v53  ;;  %v320_v16 = vadd.f32 %v319_v6, %v318_v58  ;;  %v493_v18 = vsel %vm479_vm1, %v264_v5, %v236_v4  ;;  %v244_v53 = vadd.f32 %v162_v20, %v86_v30 }
  0x6c   :  { %v375_v17 = vrot.slane %v374_v7, 1  ;;  %v348_v21 = vadd.f32 %v347_v10, %v346_v62  ;;  %v494_v24 = vsel %vm481_vm2, %v292_v9, %v493_v18  ;;  %v432_v36 = vadd.f32 %v431_v23, %v430_v12 }
  0x6d   :  { %1354 = vmatpush2.bf16.msra.mxu0 %v2166_v33  ;;  %v403_v22 = vrot.slane %v402_v11, 1  ;;  %v495_v29 = vsel %vm483_vm3, %v320_v16, %v494_v24  ;;  %v170_v33 = vsel %vm154_vm0, %v98_v13, 0.0  ;;  %v328_v57 = vadd.f32 %v186_v42, %v110_v40  ;;  %v103_v40 = vld [vmem:[#allocation3 + $0xa0] sm:$0xff] }
  0x6e   :  { %1395 = vmatpush2.bf16.msra.mxu1 %v2167_v38  ;;  %1355 = vmatprep.subr.bf16.mxu0 %v2168_v45  ;;  %v376_v28 = vadd.f32 %v375_v17, %v374_v7  ;;  %v496_v37 = vsel %vm485_vm4, %v348_v21, %v495_v29  ;;  %v102_v38 = vld [vmem:[#allocation3 + $0x98] sm:$0xff]  ;;  %v272_v54 = vadd.f32 %v170_v33, %v94_v31  ;;  %v245_v61 = vrot.slane %v244_v53, 4  ;;  %v87_v33 = vld [vmem:[#allocation3 + $0x20] sm:$0xff] }
  0x6f   :  { %1396 = vmatprep.subr.bf16.mxu1 %v2170_v46  ;;  %v404_v35 = vadd.f32 %v403_v22, %v402_v11  ;;  %v126_v45 = vld [vmem:[#allocation3 + $0x158] sm:$0xff]  ;;  %v300_v56 = vadd.f32 %v178_v34, %v102_v38  ;;  %v356_v58 = vadd.f32 %v194_v47, %v118_v41  ;;  %v95_v34 = vld [vmem:[#allocation3 + $0x60] sm:$0xff] }
  0x70   :  { %v497_v43 = vsel %vm487_vm5, %v376_v28, %v496_v37  ;;  %v134_v46 = vld [vmem:[#allocation3 + $0x198] sm:$0xff]  ;;  %v273_v62 = vrot.slane %v272_v54, 4  ;;  %v384_v63 = vadd.f32 %v202_v48, %v126_v45  ;;  %v246_v5 = vadd.f32 %v245_v61, %v244_v53  ;;  %v111_v41 = vld [vmem:[#allocation3 + $0xe0] sm:$0xff] }
  0x71   :  { %1356 = vmatpush2.bf16.msra.mxu0 %v2172_v55  ;;  %v498_v50 = vsel %vm489_vm6, %v404_v35, %v497_v43  ;;  %v301_v1 = vrot.slane %v300_v56, 4  ;;  %v412_v4 = vadd.f32 %v210_v49, %v134_v46  ;;  %v119_v47 = vld [vmem:[#allocation3 + $0x120] sm:$0xff]  ;;  %v159_v61 = vsel %vm154_vm0, %v87_v33, 0.0 }
  0x72   :  { %1397 = vmatpush2.bf16.msra.mxu1 %v2173_v60  ;;  %1357 = vmatprep.subr.bf16.mxu0 %v2174_v2  ;;  %v499_v55 = vsel %vm491_vm7, %v432_v36, %v498_v50  ;;  %v329_v2 = vrot.slane %v328_v57, 4  ;;  %v274_v6 = vadd.f32 %v273_v62, %v272_v54  ;;  %v385_v7 = vrot.slane %v384_v63, 4  ;;  %v91_v53 = vld [vmem:[#allocation3 + $0x40] sm:$0xff] }
  0x73   :  { %1398 = vmatprep.subr.bf16.mxu1 %v2176_v3  ;;  %v2514_v60 = vpack.c.bf16 %v499_v55, %v499_v55  ;;  %v357_v3 = vrot.slane %v356_v58, 4  ;;  %v302_v9 = vadd.f32 %v301_v1, %v300_v56  ;;  %v413_v12 = vrot.slane %v412_v4, 4  ;;  %v127_v54 = vld [vmem:[#allocation3 + $0x160] sm:$0xff] }
  0x74   :  { %v330_v10 = vadd.f32 %v329_v2, %v328_v57  ;;  %v247_v13 = vrot.slane %v246_v5, 2  ;;  %v275_v14 = vrot.slane %v274_v6, 2  ;;  %v135_v55 = vld [vmem:[#allocation3 + $0x1a0] sm:$0xff]  ;;  %v167_v1 = vsel %vm154_vm0, %v95_v34, 0.0 }
  0x75   :  { %1358 = vmatpush2.bf16.msra.mxu0 %v2178_v8  ;;  %1359 = vmatprep.mubr.bf16.mxu0 %v2514_v60  ;;  %v440_v8 = vadd.f32 %v218_v52, %v142_v51  ;;  %v358_v11 = vadd.f32 %v357_v3, %v356_v58  ;;  %v303_v17 = vrot.slane %v302_v9, 2  ;;  %v414_v20 = vadd.f32 %v413_v12, %v412_v4  ;;  %v83_v52 = vld [vmem:[#allocation3] sm:$0xff] }
  0x76   :  { %1399 = vmatpush2.bf16.msra.mxu1 %v2179_v15  ;;  %1409 = vmatprep.subr.bf16.mxu0 %v2182_v59  ;;  %v386_v15 = vadd.f32 %v385_v7, %v384_v63  ;;  %v331_v18 = vrot.slane %v330_v10, 2  ;;  %v248_v21 = vadd.f32 %v247_v13, %v246_v5  ;;  %v276_v22 = vadd.f32 %v275_v14, %v274_v6  ;;  %v143_v59 = vld [vmem:[#allocation3 + $0x1e0] sm:$0xff] }
  0x77   :  { %1450 = vmatprep.subr.bf16.mxu1 %v2185_v0  ;;  %v441_v16 = vrot.slane %v440_v8, 4  ;;  %v359_v19 = vrot.slane %v358_v11, 2  ;;  %v304_v25 = vadd.f32 %v303_v17, %v302_v9  ;;  %v415_v28 = vrot.slane %v414_v20, 2  ;;  %v99_v0 = vld [vmem:[#allocation3 + $0x80] sm:$0xff] }
  0x78   :  { %v387_v23 = vrot.slane %v386_v15, 2  ;;  %v332_v26 = vadd.f32 %v331_v18, %v330_v10  ;;  %v249_v29 = vrot.slane %v248_v21, 1  ;;  %v277_v30 = vrot.slane %v276_v22, 1  ;;  %v107_v5 = vld [vmem:[#allocation3 + $0xc0] sm:$0xff] }
  0x79   :  { %v442_v24 = vadd.f32 %v441_v16, %v440_v8  ;;  %v360_v27 = vadd.f32 %v359_v19, %v358_v11  ;;  %v305_v35 = vrot.slane %v304_v25, 1  ;;  %v416_v38 = vadd.f32 %v415_v28, %v414_v20  ;;  %v115_v6 = vld [vmem:[#allocation3 + $0x100] sm:$0xff] }
  0x7a   :  { %v388_v31 = vadd.f32 %v387_v23, %v386_v15  ;;  %v333_v36 = vrot.slane %v332_v26, 1  ;;  %v250_v42 = vadd.f32 %v249_v29, %v248_v21  ;;  %v278_v43 = vadd.f32 %v277_v30, %v276_v22  ;;  %v123_v7 = vld [vmem:[#allocation3 + $0x140] sm:$0xff] }
  0x7b   :  { %v443_v32 = vrot.slane %v442_v24, 2  ;;  %v361_v37 = vrot.slane %v360_v27, 1  ;;  %v306_v48 = vadd.f32 %v305_v35, %v304_v25  ;;  %v417_v51 = vrot.slane %v416_v38, 1  ;;  %v131_v19 = vld [vmem:[#allocation3 + $0x180] sm:$0xff] }
  0x7c   :  { %v389_v45 = vrot.slane %v388_v31, 1  ;;  %v334_v49 = vadd.f32 %v333_v36, %v332_v26  ;;  %v507_v58 = vsel %vm479_vm1, %v278_v43, %v250_v42  ;;  %v175_v2 = vsel %vm154_vm0, %v103_v40, 0.0 }
  0x7d   :  { %v444_v46 = vadd.f32 %v443_v32, %v442_v24  ;;  %v362_v50 = vadd.f32 %v361_v37, %v360_v27  ;;  %v418_v62 = vadd.f32 %v417_v51, %v416_v38  ;;  %v508_v63 = vsel %vm481_vm2, %v306_v48, %v507_v58  ;;  %v139_v24 = vld [vmem:[#allocation3 + $0x1c0] sm:$0xff]  ;;  %v89_v58 = vld [vmem:[#allocation3 + $0x30] sm:$0xff] }
  0x7e   :  { %v390_v56 = vadd.f32 %v389_v45, %v388_v31  ;;  %v509_v4 = vsel %vm483_vm3, %v334_v49, %v508_v63  ;;  %v183_v8 = vsel %vm154_vm0, %v111_v41, 0.0  ;;  %v191_v9 = vsel %vm154_vm0, %v119_v47, 0.0 }
  0x7f   :  { %v445_v57 = vrot.slane %v444_v46, 1  ;;  %v510_v10 = vsel %vm485_vm4, %v362_v50, %v509_v4  ;;  %v199_v11 = vsel %vm154_vm0, %v127_v54, 0.0  ;;  %v207_v12 = vsel %vm154_vm0, %v135_v55, 0.0  ;;  %v97_v4 = vld [vmem:[#allocation3 + $0x70] sm:$0xff] }
  0x80   :  { %v215_v13 = vsel %vm154_vm0, %v143_v59, 0.0  ;;  %v511_v14 = vsel %vm487_vm5, %v390_v56, %v510_v10  ;;  %v223_v15 = vadd.f32 %v159_v61, %v83_v52  ;;  %v251_v16 = vadd.f32 %v167_v1, %v91_v53  ;;  %v113_v10 = vld [vmem:[#allocation3 + $0xf0] sm:$0xff] }
  0x81   :  { %v446_v3 = vadd.f32 %v445_v57, %v444_v46  ;;  %v279_v17 = vadd.f32 %v175_v2, %v99_v0  ;;  %v512_v18 = vsel %vm489_vm6, %v418_v62, %v511_v14  ;;  %v307_v20 = vadd.f32 %v183_v8, %v107_v5  ;;  %v105_v5 = vld [vmem:[#allocation3 + $0xb0] sm:$0xff] }
  0x82   :  { %v335_v21 = vadd.f32 %v191_v9, %v115_v6  ;;  %v363_v22 = vadd.f32 %v199_v11, %v123_v7  ;;  %v224_v25 = vrot.slane %v223_v15, 4  ;;  %v252_v26 = vrot.slane %v251_v16, 4 }
  0x83   :  { %v513_v23 = vsel %vm491_vm7, %v446_v3, %v512_v18  ;;  %v280_v27 = vrot.slane %v279_v17, 4  ;;  %v308_v29 = vrot.slane %v307_v20, 4  ;;  %v391_v35 = vadd.f32 %v207_v12, %v131_v19  ;;  %v121_v18 = vld [vmem:[#allocation3 + $0x130] sm:$0xff] }
  0x84   :  { %v2540_v28 = vpack.c.bf16 %v513_v23, %v513_v23  ;;  %v336_v30 = vrot.slane %v335_v21, 4  ;;  %v364_v31 = vrot.slane %v363_v22, 4  ;;  %v225_v32 = vadd.f32 %v224_v25, %v223_v15  ;;  %v85_v15 = vld [vmem:[#allocation3 + $0x10] sm:$0xff] }
  0x85   :  { %v253_v33 = vadd.f32 %v252_v26, %v251_v16  ;;  %v281_v34 = vadd.f32 %v280_v27, %v279_v17  ;;  %v309_v36 = vadd.f32 %v308_v29, %v307_v20  ;;  %v419_v40 = vadd.f32 %v215_v13, %v139_v24  ;;  %v93_v16 = vld [vmem:[#allocation3 + $0x50] sm:$0xff] }
  0x86   :  { %1400 = vmatprep.mubr.bf16.mxu1 %v2540_v28  ;;  %v337_v37 = vadd.f32 %v336_v30, %v335_v21  ;;  %v365_v38 = vadd.f32 %v364_v31, %v363_v22  ;;  %v226_v41 = vrot.slane %v225_v32, 2  ;;  %v392_v45 = vrot.slane %v391_v35, 4  ;;  %v101_v17 = vld [vmem:[#allocation3 + $0x90] sm:$0xff] }
  0x87   :  { %v254_v42 = vrot.slane %v253_v33, 2  ;;  %v282_v43 = vrot.slane %v281_v34, 2  ;;  %v310_v46 = vrot.slane %v309_v36, 2  ;;  %v420_v49 = vrot.slane %v419_v40, 4  ;;  %v129_v19 = vld [vmem:[#allocation3 + $0x170] sm:$0xff] }
  0x88   :  { %v338_v47 = vrot.slane %v337_v37, 2  ;;  %v366_v48 = vrot.slane %v365_v38, 2  ;;  %v227_v50 = vadd.f32 %v226_v41, %v225_v32  ;;  %v393_v53 = vadd.f32 %v392_v45, %v391_v35  ;;  %v137_v22 = vld [vmem:[#allocation3 + $0x1b0] sm:$0xff] }
  0x89   :  { %v255_v51 = vadd.f32 %v254_v42, %v253_v33  ;;  %v283_v52 = vadd.f32 %v282_v43, %v281_v34  ;;  %v311_v54 = vadd.f32 %v310_v46, %v309_v36  ;;  %v421_v57 = vadd.f32 %v420_v49, %v419_v40  ;;  %v145_v23 = vld [vmem:[#allocation3 + $0x1f0] sm:$0xff] }
  0x8a   :  { %v339_v55 = vadd.f32 %v338_v47, %v337_v37  ;;  %v367_v56 = vadd.f32 %v366_v48, %v365_v38  ;;  %v228_v59 = vrot.slane %v227_v50, 1  ;;  %v394_v63 = vrot.slane %v393_v53, 2  ;;  %v109_v29 = vld [vmem:[#allocation3 + $0xd0] sm:$0xff] }
  0x8b   :  { %v256_v61 = vrot.slane %v255_v51, 1  ;;  %v284_v62 = vrot.slane %v283_v52, 1  ;;  %v312_v0 = vrot.slane %v311_v54, 1  ;;  %v422_v3 = vrot.slane %v421_v57, 2  ;;  %v117_v30 = vld [vmem:[#allocation3 + $0x110] sm:$0xff] }
  0x8c   :  { %v340_v1 = vrot.slane %v339_v55, 1  ;;  %v368_v2 = vrot.slane %v367_v56, 1  ;;  %v229_v6 = vadd.f32 %v228_v59, %v227_v50  ;;  %v395_v9 = vadd.f32 %v394_v63, %v393_v53  ;;  %v125_v35 = vld [vmem:[#allocation3 + $0x150] sm:$0xff]  ;;  %v2188_v63 = vld [vmem:[#allocation6 + $0xcc] ss:$16 sps:$4 sm:$0xff]  }
  0x8d   :  { %v257_v7 = vadd.f32 %v256_v61, %v255_v51  ;;  %v285_v8 = vadd.f32 %v284_v62, %v283_v52  ;;  %v313_v11 = vadd.f32 %v312_v0, %v311_v54  ;;  %v423_v14 = vadd.f32 %v422_v3, %v421_v57  ;;  %v133_v49 = vld [vmem:[#allocation3 + $0x190] sm:$0xff] }
  0x8e   :  { %v341_v12 = vadd.f32 %v340_v1, %v339_v55  ;;  %v369_v13 = vadd.f32 %v368_v2, %v367_v56  ;;  %v396_v20 = vrot.slane %v395_v9, 1  ;;  %v161_v24 = vsel %vm154_vm0, %v89_v58, 0.0  ;;  %v141_v50 = vld [vmem:[#allocation3 + $0x1d0] sm:$0xff]  ;;  %v2180_v58 = vld [vmem:[#allocation6 + $0xe8] ss:$16 sps:$4 sm:$0xff]  }
  0x8f   :  { %v480_v21 = vsel %vm479_vm1, %v257_v7, %v229_v6  ;;  %v169_v25 = vsel %vm154_vm0, %v97_v4, 0.0  ;;  %v424_v26 = vrot.slane %v423_v14, 1  ;;  %v177_v31 = vsel %vm154_vm0, %v105_v5, 0.0 }
  0x90   :  { %v482_v27 = vsel %vm481_vm2, %v285_v8, %v480_v21  ;;  %v185_v32 = vsel %vm154_vm0, %v113_v10, 0.0  ;;  %v397_v33 = vadd.f32 %v396_v20, %v395_v9  ;;  %v193_v36 = vsel %vm154_vm0, %v121_v18, 0.0  ;;  %v2186_v8 = vld [vmem:[#allocation6 + $0xc8] ss:$16 sps:$4 sm:$0xff]  }
  0x91   :  { %v484_v34 = vsel %vm483_vm3, %v313_v11, %v482_v27  ;;  %v201_v37 = vsel %vm154_vm0, %v129_v19, 0.0  ;;  %v425_v38 = vadd.f32 %v424_v26, %v423_v14  ;;  %v209_v41 = vsel %vm154_vm0, %v137_v22, 0.0  ;;  %v2192_v26 = vld [vmem:[#allocation6 + $0xa8] ss:$16 sps:$4 sm:$0xff]  }
  0x92   :  { %v486_v40 = vsel %vm485_vm4, %v341_v12, %v484_v34  ;;  %v217_v42 = vsel %vm154_vm0, %v145_v23, 0.0  ;;  %v237_v45 = vadd.f32 %v161_v24, %v85_v15  ;;  %v265_v46 = vadd.f32 %v169_v25, %v93_v16 }
  0x93   :  { %v488_v43 = vsel %vm487_vm5, %v369_v13, %v486_v40  ;;  %v293_v47 = vadd.f32 %v177_v31, %v101_v17  ;;  %v321_v51 = vadd.f32 %v185_v32, %v109_v29  ;;  %v349_v52 = vadd.f32 %v193_v36, %v117_v30  ;;  %v2194_v13 = vld [vmem:[#allocation6 + $0xac] ss:$16 sps:$4 sm:$0xff]  }
  0x94   :  { %v490_v48 = vsel %vm489_vm6, %v397_v33, %v488_v43  ;;  %v377_v53 = vadd.f32 %v201_v37, %v125_v35  ;;  %v238_v55 = vrot.slane %v237_v45, 4  ;;  %v266_v56 = vrot.slane %v265_v46, 4  ;;  %v2200_v35 = vld [vmem:[#allocation6 + $0x8c] ss:$16 sps:$4 sm:$0xff]  }
  0x95   :  { %v492_v54 = vsel %vm491_vm7, %v425_v38, %v490_v48  ;;  %v294_v57 = vrot.slane %v293_v47, 4  ;;  %v322_v59 = vrot.slane %v321_v51, 4  ;;  %v350_v61 = vrot.slane %v349_v52, 4  ;;  %v2198_v48 = vld [vmem:[#allocation6 + $0x88] ss:$16 sps:$4 sm:$0xff]  }
  0x96   :  { %v2566_v44 = vpack.c.bf16 %v492_v54, %v492_v54  ;;  %v378_v62 = vrot.slane %v377_v53, 4  ;;  %v239_v0 = vadd.f32 %v238_v55, %v237_v45  ;;  %v267_v1 = vadd.f32 %v266_v56, %v265_v46 }
  0x97   :  { %v295_v2 = vadd.f32 %v294_v57, %v293_v47  ;;  %v405_v3 = vadd.f32 %v209_v41, %v133_v49  ;;  %v323_v4 = vadd.f32 %v322_v59, %v321_v51  ;;  %v351_v5 = vadd.f32 %v350_v61, %v349_v52  ;;  %v2206_v49 = vld [vmem:[#allocation6 + $0x6c] ss:$16 sps:$4 sm:$0xff]   ;;  %v2204_v57 = vld [vmem:[#allocation6 + $0x68] ss:$16 sps:$4 sm:$0xff]  }
  0x98   :  { %1360 = vmatmul.mubr.bf16.vlgmr.msra.gmra.mxu0 %v2566_v44  ;;  %v379_v6 = vadd.f32 %v378_v62, %v377_v53  ;;  %v433_v7 = vadd.f32 %v217_v42, %v141_v50  ;;  %v240_v9 = vrot.slane %v239_v0, 2  ;;  %v268_v10 = vrot.slane %v267_v1, 2  ;;  %v2212_v59 = vld [vmem:[#allocation6 + $0x4c] ss:$16 sps:$4 sm:$0xff]   ;;  %v2183_v62 = vld [vmem:[#allocation6 + $0x2e8] ss:$16 sps:$4 sm:$0xff]  }
  0x99   :  { %v296_v11 = vrot.slane %v295_v2, 2  ;;  %v406_v12 = vrot.slane %v405_v3, 4  ;;  %1410 = vmatpush1.bf16.msra.mxu0 %v2180_v58  ;;  %1441 = vmatprep.mubr.bf16.mxu0 %v2514_v60  ;;  %v324_v14 = vrot.slane %v323_v4, 2  ;;  %v352_v15 = vrot.slane %v351_v5, 2 }
  0x9a   :  { %v380_v16 = vrot.slane %v379_v6, 2  ;;  %v434_v17 = vrot.slane %v433_v7, 4  ;;  %1411 = vmatprep.subr.bf16.mxu0 %v2188_v63  ;;  %v241_v18 = vadd.f32 %v240_v9, %v239_v0  ;;  %v269_v19 = vadd.f32 %v268_v10, %v267_v1  ;;  %v2191_v0 = vld [vmem:[#allocation6 + $0x2cc] ss:$16 sps:$4 sm:$0xff]   ;;  %v2189_v1 = vld [vmem:[#allocation6 + $0x2c8] ss:$16 sps:$4 sm:$0xff]  }
  0x9b   :  { %v297_v20 = vadd.f32 %v296_v11, %v295_v2  ;;  %v407_v21 = vadd.f32 %v406_v12, %v405_v3  ;;  %v325_v22 = vadd.f32 %v324_v14, %v323_v4  ;;  %v353_v23 = vadd.f32 %v352_v15, %v351_v5  ;;  %v2210_v2 = vld [vmem:[#allocation6 + $0x48] ss:$16 sps:$4 sm:$0xff]   ;;  %v2197_v3 = vld [vmem:[#allocation6 + $0x2ac] ss:$16 sps:$4 sm:$0xff]  }
  0x9c   :  { %v381_v24 = vadd.f32 %v380_v16, %v379_v6  ;;  %v435_v25 = vadd.f32 %v434_v17, %v433_v7  ;;  %v242_v27 = vrot.slane %v241_v18, 1  ;;  %v270_v29 = vrot.slane %v269_v19, 1  ;;  %v2218_v4 = vld [vmem:[#allocation6 + $0x2c] ss:$16 sps:$4 sm:$0xff]   ;;  %v2216_v5 = vld [vmem:[#allocation6 + $0x28] ss:$16 sps:$4 sm:$0xff]  }
  0x9d   :  { %v298_v30 = vrot.slane %v297_v20, 1  ;;  %v408_v31 = vrot.slane %v407_v21, 2  ;;  %1412 = vmatpush1.bf16.msra.mxu0 %v2186_v8  ;;  %v326_v60 = vrot.slane %v325_v22, 1  ;;  %v354_v32 = vrot.slane %v353_v23, 1  ;;  %v2224_v6 = vld [vmem:[#allocation6 + $0xc] ss:$16 sps:$4 sm:$0xff]  }
  0x9e   :  { %v382_v33 = vrot.slane %v381_v24, 1  ;;  %v436_v34 = vrot.slane %v435_v25, 2  ;;  %1413 = vmatprep.subr.bf16.mxu0 %v2194_v13  ;;  %v243_v36 = vadd.f32 %v242_v27, %v241_v18  ;;  %v271_v37 = vadd.f32 %v270_v29, %v269_v19  ;;  %v2195_v7 = vld [vmem:[#allocation6 + $0x2a8] ss:$16 sps:$4 sm:$0xff]   ;;  %v2203_v8 = vld [vmem:[#allocation6 + $0x28c] ss:$16 sps:$4 sm:$0xff]  }
  0x9f   :  { %v299_v38 = vadd.f32 %v298_v30, %v297_v20  ;;  %v409_v40 = vadd.f32 %v408_v31, %v407_v21  ;;  %v327_v41 = vadd.f32 %v326_v60, %v325_v22  ;;  %v355_v42 = vadd.f32 %v354_v32, %v353_v23  ;;  %v2222_v9 = vld [vmem:[#allocation6 + $0x8] ss:$16 sps:$4 sm:$0xff]   ;;  %v2230_v10 = vld [vmem:[#allocation6 + $0x1ec] ss:$16 sps:$4 sm:$0xff]  }
  0xa0   :  { %v437_v43 = vadd.f32 %v436_v34, %v435_v25  ;;  %v383_v45 = vadd.f32 %v382_v33, %v381_v24  ;;  %v500_v47 = vsel %vm479_vm1, %v271_v37, %v243_v36  ;;  %v2201_v11 = vld [vmem:[#allocation6 + $0x288] ss:$16 sps:$4 sm:$0xff]   ;;  %v2209_v12 = vld [vmem:[#allocation6 + $0x26c] ss:$16 sps:$4 sm:$0xff]  }
  0xa1   :  { %v410_v46 = vrot.slane %v409_v40, 1  ;;  %1414 = vmatpush1.bf16.msra.mxu0 %v2192_v26  ;;  %v501_v51 = vsel %vm481_vm2, %v299_v38, %v500_v47  ;;  %v2228_v13 = vld [vmem:[#allocation6 + $0x1e8] ss:$16 sps:$4 sm:$0xff]   ;;  %v2236_v14 = vld [vmem:[#allocation6 + $0x1cc] ss:$16 sps:$4 sm:$0xff]  }
  0xa2   :  { %v438_v50 = vrot.slane %v437_v43, 1  ;;  %1415 = vmatprep.subr.bf16.mxu0 %v2200_v35  ;;  %v502_v53 = vsel %vm483_vm3, %v327_v41, %v501_v51  ;;  %v2207_v15 = vld [vmem:[#allocation6 + $0x268] ss:$16 sps:$4 sm:$0xff]   ;;  %v2242_v17 = vld [vmem:[#allocation6 + $0x1ac] ss:$16 sps:$4 sm:$0xff]  }
  0xa3   :  { %v411_v52 = vadd.f32 %v410_v46, %v409_v40  ;;  %v503_v55 = vsel %vm485_vm4, %v355_v42, %v502_v53  ;;  %v2234_v16 = vld [vmem:[#allocation6 + $0x1c8] ss:$16 sps:$4 sm:$0xff]   ;;  %v2221_v19 = vld [vmem:[#allocation6 + $0x22c] ss:$16 sps:$4 sm:$0xff]  }
  0xa4   :  { %v439_v54 = vadd.f32 %v438_v50, %v437_v43  ;;  %v504_v56 = vsel %vm487_vm5, %v383_v45, %v503_v55  ;;  %v2213_v18 = vld [vmem:[#allocation6 + $0x248] ss:$16 sps:$4 sm:$0xff]   ;;  %v2248_v21 = vld [vmem:[#allocation6 + $0x18c] ss:$16 sps:$4 sm:$0xff]  }
  0xa5   :  { %1416 = vmatpush1.bf16.msra.mxu0 %v2198_v48  ;;  %v505_v58 = vsel %vm489_vm6, %v411_v52, %v504_v56  ;;  %v2240_v20 = vld [vmem:[#allocation6 + $0x1a8] ss:$16 sps:$4 sm:$0xff]   ;;  %v2227_v23 = vld [vmem:[#allocation6 + $0x20c] ss:$16 sps:$4 sm:$0xff]  }
  0xa6   :  { %1417 = vmatprep.subr.bf16.mxu0 %v2206_v49  ;;  %v506_v61 = vsel %vm491_vm7, %v439_v54, %v505_v58  ;;  %v2219_v22 = vld [vmem:[#allocation6 + $0x228] ss:$16 sps:$4 sm:$0xff]   ;;  %v2254_v25 = vld [vmem:[#allocation6 + $0x16c] ss:$16 sps:$4 sm:$0xff]  }
  0xa7   :  { %v2577_v63 = vpack.c.bf16 %v506_v61, %v506_v61  ;;  %v2246_v24 = vld [vmem:[#allocation6 + $0x188] ss:$16 sps:$4 sm:$0xff]   ;;  %v2233_v27 = vld [vmem:[#allocation6 + $0x3ec] ss:$16 sps:$4 sm:$0xff]  }
  0xa8   :  { %v2225_v26 = vld [vmem:[#allocation6 + $0x208] ss:$16 sps:$4 sm:$0xff]   ;;  %v2260_v30 = vld [vmem:[#allocation6 + $0x14c] ss:$16 sps:$4 sm:$0xff]  }
  0xa9   :  { %1418 = vmatpush1.bf16.msra.mxu0 %v2204_v57  ;;  %1401 = vmatmul.mubr.bf16.vlgmr.msra.gmra.mxu1 %v2577_v63  ;;  %v2252_v29 = vld [vmem:[#allocation6 + $0x168] ss:$16 sps:$4 sm:$0xff]   ;;  %v2239_v60 = vld [vmem:[#allocation6 + $0x3cc] ss:$16 sps:$4 sm:$0xff]  }
  0xaa   :  { %1419 = vmatprep.subr.bf16.mxu0 %v2212_v59  ;;  %1451 = vmatpush1.bf16.msra.mxu1 %v2183_v62  ;;  %v2231_v31 = vld [vmem:[#allocation6 + $0x3e8] ss:$16 sps:$4 sm:$0xff]   ;;  %v2266_v33 = vld [vmem:[#allocation6 + $0x12c] ss:$16 sps:$4 sm:$0xff]  }
  0xab   :  { %1482 = vmatprep.mubr.bf16.mxu1 %v2540_v28  ;;  %1452 = vmatprep.subr.bf16.mxu1 %v2191_v0  ;;  %v2215_v28 = vld [vmem:[#allocation6 + $0x24c] ss:$16 sps:$4 sm:$0xff]   ;;  %v2258_v32 = vld [vmem:[#allocation6 + $0x148] ss:$16 sps:$4 sm:$0xff]  }
  0xac   :  { %v2237_v34 = vld [vmem:[#allocation6 + $0x3c8] ss:$16 sps:$4 sm:$0xff]   ;;  %v2245_v35 = vld [vmem:[#allocation6 + $0x3ac] ss:$16 sps:$4 sm:$0xff]  }
  0xad   :  { %1420 = vmatpush1.bf16.msra.mxu0 %v2210_v2  ;;  %v2264_v36 = vld [vmem:[#allocation6 + $0x128] ss:$16 sps:$4 sm:$0xff]   ;;  %v2272_v37 = vld [vmem:[#allocation6 + $0x10c] ss:$16 sps:$4 sm:$0xff]  }
  0xae   :  { %1421 = vmatprep.subr.bf16.mxu0 %v2218_v4  ;;  %1453 = vmatpush1.bf16.msra.mxu1 %v2189_v1  ;;  %v2243_v38 = vld [vmem:[#allocation6 + $0x3a8] ss:$16 sps:$4 sm:$0xff]   ;;  %v2251_v40 = vld [vmem:[#allocation6 + $0x38c] ss:$16 sps:$4 sm:$0xff]  }
  0xaf   :  { %1454 = vmatprep.subr.bf16.mxu1 %v2197_v3  ;;  %v2270_v41 = vld [vmem:[#allocation6 + $0x108] ss:$16 sps:$4 sm:$0xff]   ;;  %v2276_v42 = vld [vmem:[#allocation9 + $0x78] sm:$0xff]   ;;  %v2280_v51 = vld [vmem:[#allocation9 + $0x68] sm:$0xff]  }
  0xb0   :  { %v2249_v43 = vld [vmem:[#allocation6 + $0x388] ss:$16 sps:$4 sm:$0xff]   ;;  %v2257_v45 = vld [vmem:[#allocation6 + $0x36c] ss:$16 sps:$4 sm:$0xff]  }
  0xb1   :  { %1422 = vmatpush1.bf16.msra.mxu0 %v2216_v5  ;;  %v2277_v46 = vld [vmem:[#allocation9 + $0x38] sm:$0xff]   ;;  %v2278_v47 = vld [vmem:[#allocation9 + $0x70] sm:$0xff]   ;;  %v2281_v54 = vld [vmem:[#allocation9 + $0x28] sm:$0xff]  }
  0xb2   :  { %1423 = vmatprep.subr.bf16.mxu0 %v2224_v6  ;;  %1455 = vmatpush1.bf16.msra.mxu1 %v2195_v7  ;;  %v2255_v48 = vld [vmem:[#allocation6 + $0x368] ss:$16 sps:$4 sm:$0xff]   ;;  %v2263_v49 = vld [vmem:[#allocation6 + $0x34c] ss:$16 sps:$4 sm:$0xff]  }
  0xb3   :  { %1456 = vmatprep.subr.bf16.mxu1 %v2203_v8  ;;  %v2279_v50 = vld [vmem:[#allocation9 + $0x30] sm:$0xff]   ;;  %v2269_v53 = vld [vmem:[#allocation6 + $0x32c] ss:$16 sps:$4 sm:$0xff]   ;;  %v2282_v55 = vld [vmem:[#allocation9 + $0x60] sm:$0xff]  }
  0xb4   :  { %v2261_v52 = vld [vmem:[#allocation6 + $0x348] ss:$16 sps:$4 sm:$0xff]   ;;  %v2275_v57 = vld [vmem:[#allocation6 + $0x30c] ss:$16 sps:$4 sm:$0xff]  }
  0xb5   :  { %1424 = vmatpush1.bf16.msra.mxu0 %v2222_v9  ;;  %v2267_v56 = vld [vmem:[#allocation6 + $0x328] ss:$16 sps:$4 sm:$0xff]   ;;  %v2285_v61 = vld [vmem:[#allocation9 + $0x18] sm:$0xff]   ;;  %v2288_v1 = vld [vmem:[#allocation9 + $0x48] sm:$0xff]  }
  0xb6   :  { %1425 = vmatprep.subr.bf16.mxu0 %v2230_v10  ;;  %1457 = vmatpush1.bf16.msra.mxu1 %v2201_v11  ;;  %v2283_v58 = vld [vmem:[#allocation9 + $0x20] sm:$0xff]   ;;  %v2286_v62 = vld [vmem:[#allocation9 + $0x50] sm:$0xff]   ;;  %v2289_v2 = vld [vmem:[#allocation9 + $0x8] sm:$0xff]  }
  0xb7   :  { %1458 = vmatprep.subr.bf16.mxu1 %v2209_v12  ;;  %v2273_v59 = vld [vmem:[#allocation6 + $0x308] ss:$16 sps:$4 sm:$0xff]   ;;  %v2292_v5 = vld [vmem:[#allocation9 + $0xf8] sm:$0xff]   ;;  %v2296_v9 = vld [vmem:[#allocation9 + $0xe8] sm:$0xff]  }
  0xb8   :  { %v2287_v0 = vld [vmem:[#allocation9 + $0x10] sm:$0xff]   ;;  %v2290_v3 = vld [vmem:[#allocation9 + $0x40] sm:$0xff]   ;;  %v2293_v6 = vld [vmem:[#allocation9 + $0xb8] sm:$0xff]  }
  0xb9   :  { %1426 = vmatpush2.bf16.msra.mxu0 %v2228_v13  ;;  %v2291_v4 = vld [vmem:[#allocation9] sm:$0xff]   ;;  %v2294_v7 = vld [vmem:[#allocation9 + $0xf0] sm:$0xff]   ;;  %v2300_v12 = vld [vmem:[#allocation9 + $0xd8] sm:$0xff]  }
  0xba   :  { %1427 = vmatprep.subr.bf16.mxu0 %v2236_v14  ;;  %1459 = vmatpush1.bf16.msra.mxu1 %v2207_v15  ;;  %v2295_v8 = vld [vmem:[#allocation9 + $0xb0] sm:$0xff]   ;;  %v2298_v10 = vld [vmem:[#allocation9 + $0xe0] sm:$0xff]   ;;  %v2301_v13 = vld [vmem:[#allocation9 + $0x98] sm:$0xff]  }
  0xbb   :  { %1460 = vmatprep.subr.bf16.mxu1 %v2215_v28  ;;  %v2299_v11 = vld [vmem:[#allocation9 + $0xa0] sm:$0xff]   ;;  %v2302_v14 = vld [vmem:[#allocation9 + $0xd0] sm:$0xff]   ;;  %v2304_v28 = vld [vmem:[#allocation9 + $0xc8] sm:$0xff]  }
  0xbc   :  { %v2303_v15 = vld [vmem:[#allocation9 + $0x90] sm:$0xff]  }
  0xbd   :  { %1428 = vmatpush2.bf16.msra.mxu0 %v2234_v16  ;;  %v2305_v16 = vld [vmem:[#allocation9 + $0x88] sm:$0xff]  }
  0xbe   :  { %1429 = vmatprep.subr.bf16.mxu0 %v2242_v17  ;;  %1461 = vmatpush1.bf16.msra.mxu1 %v2213_v18  ;;  %v2306_v17 = vld [vmem:[#allocation9 + $0xc0] sm:$0xff]  }
  0xbf   :  { %1462 = vmatprep.subr.bf16.mxu1 %v2221_v19  ;;  %v2307_v18 = vld [vmem:[#allocation9 + $0x80] sm:$0xff]  }
  0xc1   :  { %1430 = vmatpush2.bf16.msra.mxu0 %v2240_v20 }
  0xc2   :  { %1431 = vmatprep.subr.bf16.mxu0 %v2248_v21  ;;  %1463 = vmatpush1.bf16.msra.mxu1 %v2219_v22 }
  0xc3   :  { %1464 = vmatprep.subr.bf16.mxu1 %v2227_v23  ;;  %v669_v23 = vsub.s32 0, %v2469_v39 }
  0xc5   :  { %1432 = vmatpush2.bf16.msra.mxu0 %v2246_v24  ;;  %v665_v24 = vld [vmem:[#allocation8] sm:$0xf] }
  0xc6   :  { %1433 = vmatprep.subr.bf16.mxu0 %v2254_v25  ;;  %1465 = vmatpush1.bf16.msra.mxu1 %v2225_v26  ;;  %v673_v25 = vsub.s32 1, %v2469_v39  ;;  %v670_v26 = vrot.slane %v665_v24, %v669_v23 }
  0xc7   :  { %1466 = vmatprep.subr.bf16.mxu1 %v2233_v27 }
  0xc8   :  { %v674_v27 = vrot.slane %v665_v24, %v673_v25 }
  0xc9   :  { %1434 = vmatpush2.bf16.msra.mxu0 %v2252_v29 }
  0xca   :  { %1435 = vmatprep.subr.bf16.mxu0 %v2260_v30  ;;  %1467 = vmatpush2.bf16.msra.mxu1 %v2231_v31 }
  0xcb   :  { %1468 = vmatprep.subr.bf16.mxu1 %v2239_v60 }
  0xcd   :  { %1436 = vmatpush2.bf16.msra.mxu0 %v2258_v32 }
  0xce   :  { %1437 = vmatprep.subr.bf16.mxu0 %v2266_v33  ;;  %1469 = vmatpush2.bf16.msra.mxu1 %v2237_v34 }
  0xcf   :  { %1470 = vmatprep.subr.bf16.mxu1 %v2245_v35 }
  0xd1   :  { %1438 = vmatpush2.bf16.msra.mxu0 %v2264_v36 }
  0xd2   :  { %1439 = vmatprep.subr.bf16.mxu0 %v2272_v37  ;;  %1471 = vmatpush2.bf16.msra.mxu1 %v2243_v38 }
  0xd3   :  { %1472 = vmatprep.subr.bf16.mxu1 %v2251_v40 }
  0xd5   :  { %1440 = vmatpush2.bf16.msra.mxu0 %v2270_v41 }
  0xd6   :  { %2029 = vmatprep.subr.bf16.mxu0 %v2276_v42  ;;  %1473 = vmatpush2.bf16.msra.mxu1 %v2249_v43 }
  0xd7   :  { %1474 = vmatprep.subr.bf16.mxu1 %v2257_v45 }
  0xd8   :  { %1442 = vmatmul.mubr.bf16.vlgmr.msra.gmra.mxu0 %v2566_v44  ;;  %v2284_v44 = vld [vmem:[#allocation9 + $0x58] sm:$0xff]  }
  0xd9   :  { %2030 = vmatpush3.bf16.msra.mxu0 %v2277_v46 }
  0xda   :  { %2031 = vmatprep.subr.bf16.mxu0 %v2278_v47  ;;  %1475 = vmatpush2.bf16.msra.mxu1 %v2255_v48  ;;  %v677_v48 = vsub.s32 2, %v2469_v39 }
  0xdb   :  { %1476 = vmatprep.subr.bf16.mxu1 %v2263_v49  ;;  %v681_v49 = vsub.s32 3, %v2469_v39 }
  0xdd   :  { %2032 = vmatpush3.bf16.msra.mxu0 %v2279_v50  ;;  %v678_v50 = vrot.slane %v665_v24, %v677_v48 }
  0xde   :  { %2033 = vmatprep.subr.bf16.mxu0 %v2280_v51  ;;  %1477 = vmatpush2.bf16.msra.mxu1 %v2261_v52  ;;  %v682_v51 = vrot.slane %v665_v24, %v681_v49 }
  0xdf   :  { %1478 = vmatprep.subr.bf16.mxu1 %v2269_v53 }
  0xe1   :  { %2034 = vmatpush3.bf16.msra.mxu0 %v2281_v54 }
  0xe2   :  { %2035 = vmatprep.subr.bf16.mxu0 %v2282_v55  ;;  %1479 = vmatpush2.bf16.msra.mxu1 %v2267_v56 }
  0xe3   :  { %1480 = vmatprep.subr.bf16.mxu1 %v2275_v57 }
  0xe5   :  { %2036 = vmatpush3.bf16.msra.mxu0 %v2283_v58 }
  0xe6   :  { %2037 = vmatprep.subr.bf16.mxu0 %v2284_v44  ;;  %1481 = vmatpush2.bf16.msra.mxu1 %v2273_v59 }
  0xe7   :  { %2051 = vmatprep.subr.bf16.mxu1 %v2292_v5 }
  0xe9   :  { %2038 = vmatpush3.bf16.msra.mxu0 %v2285_v61  ;;  %1483 = vmatmul.mubr.bf16.vlgmr.msra.gmra.mxu1 %v2577_v63  ;;  %v2297_v63 = vld [vmem:[#allocation9 + $0xa8] sm:$0xff]  }
  0xea   :  { %2039 = vmatprep.subr.bf16.mxu0 %v2286_v62  ;;  %2052 = vmatpush3.bf16.msra.mxu1 %v2293_v6 }
  0xeb   :  { %2053 = vmatprep.subr.bf16.mxu1 %v2294_v7  ;;  %v1996_v7 = vld [vmem:[%s2597_s4] ss:$0 sm:$0xff] }
  0xed   :  { %2040 = vmatpush3.bf16.msra.mxu0 %v2287_v0 }
  0xee   :  { %2041 = vmatprep.subr.bf16.mxu0 %v2288_v1  ;;  %2054 = vmatpush3.bf16.msra.mxu1 %v2295_v8 }
  0xef   :  { %2055 = vmatprep.subr.bf16.mxu1 %v2296_v9 }
  0xf1   :  { %2042 = vmatpush3.bf16.msra.mxu0 %v2289_v2 }
  0xf2   :  { %2043 = vmatprep.subr.bf16.mxu0 %v2290_v3  ;;  %2056 = vmatpush3.bf16.msra.mxu1 %v2297_v63 }
  0xf3   :  { %2057 = vmatprep.subr.bf16.mxu1 %v2298_v10 }
  0xf5   :  { %2044 = vmatpush3.bf16.msra.mxu0 %v2291_v4 }
  0xf6   :  { %2058 = vmatpush3.bf16.msra.mxu1 %v2299_v11 }
  0xf7   :  { %2059 = vmatprep.subr.bf16.mxu1 %v2300_v12 }
  0xfa   :  { %2060 = vmatpush3.bf16.msra.mxu1 %v2301_v13 }
  0xfb   :  { %2061 = vmatprep.subr.bf16.mxu1 %v2302_v14 }
  0xfe   :  { %2062 = vmatpush3.bf16.msra.mxu1 %v2303_v15 }
  0xff   :  { %2063 = vmatprep.subr.bf16.mxu1 %v2304_v28 }
 0x102   :  { %2064 = vmatpush3.bf16.msra.mxu1 %v2305_v16 }
 0x103   :  { %2065 = vmatprep.subr.bf16.mxu1 %v2306_v17 }
 0x106   :  { %2066 = vmatpush3.bf16.msra.mxu1 %v2307_v18 }
 0x158   :  { %v1361_v19 = vpop.f32.mrf.mxu0 }
 0x159   :  { %v1362_v29 = vadd.f32 %v1361_v19, %v670_v26 }
 0x15a   :  { %v1363_v20 = vpop.f32.mrf.mxu0 }
 0x15b   :  { %v1364_v30 = vadd.f32 %v1363_v20, %v674_v27 }
 0x15c   :  { %v1365_v21 = vpop.f32.mrf.mxu0 }
 0x15e   :  { %v1366_v22 = vpop.f32.mrf.mxu0 }
 0x169   :  { %v1402_v31 = vpop.f32.mrf.mxu1 }
 0x16a   :  { %v1403_v60 = vadd.f32 %v1402_v31, %v1362_v29 }
 0x16b   :  { %v1404_v32 = vpop.f32.mrf.mxu1 }
 0x16c   :  { %vm1491_vm8 = vcmp.ge.f32.partialorder %v1403_v60, 0.0  ;;  %v1495_v33 = vmul.f32 0.01, %v1403_v60  ;;  %v1405_v34 = vadd.f32 %v1404_v32, %v1364_v30 }
 0x16d   :  { %v1406_v35 = vpop.f32.mrf.mxu1 }
 0x16e   :  { %vm1492_vm9 = vcmp.ge.f32.partialorder %v1405_v34, 0.0  ;;  %v1496_v36 = vmul.f32 0.01, %v1405_v34  ;;  %v1499_v37 = vsel %vm1491_vm8, %v1403_v60, %v1495_v33 }
 0x16f   :  { %v1407_v38 = vpop.f32.mrf.mxu1  ;;  %v1503_v42 = vpack.c.bf16 %v1499_v37, %v1499_v37 }
 0x170   :  { %v1500_v40 = vsel %vm1492_vm9, %v1405_v34, %v1496_v36 }
 0x171   :  { %v1504_v41 = vpack.c.bf16 %v1500_v40, %v1500_v40 }
 0x173   :  { %1802 = vmatprep.mubr.bf16.mxu0 %v1504_v41 }
 0x174   :  { %1803 = vmatmul.mubr.bf16.vlgmr.msra.gmra.mxu0 %v1503_v42 }
 0x198   :  { %v1443_v43 = vpop.f32.mrf.mxu0 }
 0x199   :  { %v1444_v52 = vadd.f32 %v1443_v43, %v678_v50 }
 0x19a   :  { %v1445_v45 = vpop.f32.mrf.mxu0 }
 0x19b   :  { %v1446_v53 = vadd.f32 %v1445_v45, %v682_v51 }
 0x19c   :  { %v1447_v46 = vpop.f32.mrf.mxu0 }
 0x19e   :  { %v1448_v47 = vpop.f32.mrf.mxu0 }
 0x1a9   :  { %v1484_v54 = vpop.f32.mrf.mxu1 }
 0x1aa   :  { %v1485_v55 = vadd.f32 %v1484_v54, %v1444_v52 }
 0x1ab   :  { %v1486_v56 = vpop.f32.mrf.mxu1 }
 0x1ac   :  { %vm1493_vm10 = vcmp.ge.f32.partialorder %v1485_v55, 0.0  ;;  %v1497_v57 = vmul.f32 0.01, %v1485_v55  ;;  %v1487_v58 = vadd.f32 %v1486_v56, %v1446_v53 }
 0x1ad   :  { %v1488_v44 = vpop.f32.mrf.mxu1 }
 0x1ae   :  { %vm1494_vm11 = vcmp.ge.f32.partialorder %v1487_v58, 0.0  ;;  %v1498_v59 = vmul.f32 0.01, %v1487_v58  ;;  %v1501_v61 = vsel %vm1493_vm10, %v1485_v55, %v1497_v57 }
 0x1af   :  { %v1489_v62 = vpop.f32.mrf.mxu1  ;;  %v1505_v2 = vpack.c.bf16 %v1501_v61, %v1501_v61 }
 0x1b0   :  { %v1502_v0 = vsel %vm1494_vm11, %v1487_v58, %v1498_v59 }
 0x1b1   :  { %v1506_v1 = vpack.c.bf16 %v1502_v0, %v1502_v0 }
 0x1b3   :  { %1842 = vmatprep.mubr.bf16.mxu1 %v1506_v1 }
 0x1b4   :  { %1843 = vmatmul.mubr.bf16.vlgmr.msra.gmra.mxu1 %v1505_v2 }
 0x234   :  { %v2045_v39 = vpop.f32.mrf.mxu0 }
 0x236   :  { %v2046_v3 = vpop.f32.mrf.mxu0 }
 0x237   :  { %v2047_v6 = vadd.f32 %v2046_v3, %v2045_v39 }
 0x238   :  { %v2048_v4 = vpop.f32.mrf.mxu0 }
 0x239   :  { %v1805_v63 = vadd.f32 %v2047_v6, %v1996_v7 }
 0x23a   :  { %v2049_v5 = vpop.f32.mrf.mxu0 }
 0x274   :  { %v2067_v8 = vpop.f32.mrf.mxu1 }
 0x276   :  { %v2068_v9 = vpop.f32.mrf.mxu1 }
 0x277   :  { %v2069_v10 = vadd.f32 %v2068_v9, %v2067_v8 }
 0x278   :  { %v2070_v11 = vpop.f32.mrf.mxu1 }
 0x279   :  { %v1845_v12 = vadd.f32 %v2069_v10, %v1805_v63 }
 0x27a   :  { %v2071_v13 = vpop.f32.mrf.mxu1 }
 0x27b   :  { %1850 = vst [vmem:[#allocation11] sm:$0xff] %v1845_v12 }
 0x27c   :  { %2399 = shalt.err (!%p2396_p10)
}
 0x27d   :  { %1860 = dma.vmem_to_hbm [thread:$0]  %s1858_s19, 128, %s2598_s5, [#allocation5]  }
 0x27e   :  { %2414 = dma.done.wait [#allocation5], 128  }
 0x27f   :  { %2415 = vsyncadd [#allocation5], 4294967168 }
 0x280   :  { %1864 = vsyncpa [#allocation4], 1 }
 0x281   :  { %1865 = vsyncpa [#allocation7], 1 }
 0x282   :  { %1866 = vsyncpa [#allocation10], 1 }
 0x283   :  { %1867 = vsyncpa [#allocation5], 1 }

</bundles_post_ra>
